<compile_context>
chip_gen: v7x
topology: tpu7x:2x2x1
jax: 0.10.0
libtpu: 0.0.40
codegen_flags: <defaults>
</compile_context>

<pallas_src>
import functools
import math

import jax
import jax.numpy as jnp
from jax import lax
from jax.experimental import pallas as pl
from jax.experimental.pallas import tpu as pltpu

# Small, self-consistent config
CFG = dict(
    vocab_size=64,
    context_length=16,
    emb_dim=32,
    n_heads=4,
    n_layers=2,
    drop_rate=0.0,   # dropout is identity at inference anyway
    qkv_bias=False,
)

LANE = 128  # TPU lane width


# ----------------------------- kernel-side math ------------------------------

def _gelu_tanh(x):
    # GELU (tanh approximation), as used in the reference GPT implementation.
    return 0.5 * x * (1.0 + jnp.tanh(
        jnp.sqrt(2.0 / jnp.pi) * (x + 0.044715 * x * x * x)))


def _layer_norm(x, g, b, eps=1e-5):
    mean = jnp.mean(x, axis=-1, keepdims=True)
    var = jnp.mean((x - mean) ** 2, axis=-1, keepdims=True)  # unbiased=False
    # rsqrt -> EUP slot (vs sqrt + divide on the VALU)
    return (x - mean) * lax.rsqrt(var + eps) * g + b


def gpt_kernel(x_ref,
               ln1_g_ref, ln1_b_ref,
               wqkv_ref, wo_ref, bo_ref,
               ln2_g_ref, ln2_b_ref,
               w1_ref, b1_ref, w2_ref, b2_ref,
               lnf_g_ref, lnf_b_ref, wout_ref,
               out_ref,
               ctx_ref,
               *, n_layers, n_heads):
    S, D = x_ref.shape
    Dh = D // n_heads
    scale = 1.0 / math.sqrt(Dh)

    # Additive causal bias, built once before the layer loop. Finite (-1e30) instead of
    # -inf so that a fully-masked row (never happens for causal masks) cannot yield NaN.
    row = lax.broadcasted_iota(jnp.int32, (S, S), 0)
    col = lax.broadcasted_iota(jnp.int32, (S, S), 1)
    mask_bias = jnp.where(col > row, -1e30, 0.0).astype(jnp.float32)

    x = x_ref[...].astype(jnp.float32)
    # TODO(synk): nn.Dropout layers are identity at drop_rate=0.0 / eval; not modeled.

    for l in range(n_layers):  # static unroll over layers
        # ----- attention sub-block -----
        shortcut = x
        xn = _layer_norm(x, ln1_g_ref[l], ln1_b_ref[l])
        # One fused QKV projection: (S, D) @ (D, 3D) -> (S, 3D), bf16 in / f32 accumulate.
        qkv = jnp.dot(xn.astype(jnp.bfloat16), wqkv_ref[l],
                      preferred_element_type=jnp.float32)

        # Per-head attention; head outputs go straight into the VMEM ctx scratch
        # (no jnp.concatenate relayout).
        for h in range(n_heads):  # static per-head loop
            qh = qkv[:, h * Dh:(h + 1) * Dh]
            kh = qkv[:, D + h * Dh:D + (h + 1) * Dh]
            vh = qkv[:, 2 * D + h * Dh:2 * D + (h + 1) * Dh]
            s = jnp.dot(qh.astype(jnp.bfloat16), kh.T.astype(jnp.bfloat16),
                        preferred_element_type=jnp.float32) * scale + mask_bias
            s = s - jnp.max(s, axis=-1, keepdims=True)
            p = jnp.exp(s)
            p = p * pl.reciprocal(jnp.sum(p, axis=-1, keepdims=True), approx=True)
            ctx_ref[:, h * Dh:(h + 1) * Dh] = jnp.dot(
                p.astype(jnp.bfloat16), vh.astype(jnp.bfloat16),
                preferred_element_type=jnp.float32)

        attn = jnp.dot(ctx_ref[...].astype(jnp.bfloat16), wo_ref[l],
                       preferred_element_type=jnp.float32) + bo_ref[l]
        x = shortcut + attn

        # ----- feed-forward sub-block -----
        shortcut = x
        xn = _layer_norm(x, ln2_g_ref[l], ln2_b_ref[l])
        h1 = jnp.dot(xn.astype(jnp.bfloat16), w1_ref[l],
                     preferred_element_type=jnp.float32) + b1_ref[l]
        h1 = _gelu_tanh(h1)
        ff = jnp.dot(h1.astype(jnp.bfloat16), w2_ref[l],
                     preferred_element_type=jnp.float32) + b2_ref[l]
        x = shortcut + ff

    # final LayerNorm + LM head (lane-dense padded to 128 output columns)
    x = _layer_norm(x, lnf_g_ref[...], lnf_b_ref[...])
    out_ref[...] = jnp.dot(x.astype(jnp.bfloat16), wout_ref[...],
                           preferred_element_type=jnp.float32)


# ------------------------------- host wrapper --------------------------------

def init_params(key, cfg):
    V, C, D = cfg['vocab_size'], cfg['context_length'], cfg['emb_dim']
    L, Dff = cfg['n_layers'], 4 * cfg['emb_dim']
    ks = jax.random.split(key, 10)
    n = lambda k, shape: (0.02 * jax.random.normal(k, shape)).astype(jnp.float32)
    return dict(
        tok_emb=n(ks[0], (V, D)),
        pos_emb=n(ks[1], (C, D)),
        ln1_g=jnp.ones((L, 1, D), jnp.float32), ln1_b=jnp.zeros((L, 1, D), jnp.float32),
        wq=n(ks[2], (L, D, D)), wk=n(ks[3], (L, D, D)), wv=n(ks[4], (L, D, D)),
        wo=n(ks[5], (L, D, D)), bo=jnp.zeros((L, 1, D), jnp.float32),
        ln2_g=jnp.ones((L, 1, D), jnp.float32), ln2_b=jnp.zeros((L, 1, D), jnp.float32),
        w1=n(ks[6], (L, D, Dff)), b1=jnp.zeros((L, 1, Dff), jnp.float32),
        w2=n(ks[7], (L, Dff, D)), b2=jnp.zeros((L, 1, D), jnp.float32),
        lnf_g=jnp.ones((1, D), jnp.float32), lnf_b=jnp.zeros((1, D), jnp.float32),
        wout=n(ks[8], (D, V)),
    )


def gpt_forward(in_idx, params, cfg):
    B, S = in_idx.shape
    D, V = cfg['emb_dim'], cfg['vocab_size']
    L, H, Dff = cfg['n_layers'], cfg['n_heads'], 4 * cfg['emb_dim']
    assert D % H == 0, "emb_dim must be divisible by n_heads"
    assert S <= cfg['context_length'], "sequence length exceeds context_length"

    Vp = LANE * pl.cdiv(V, LANE)  # lane-dense padded vocab width (128 here)

    # Embedding lookup (glue): tok_emb(in_idx) + pos_emb(arange(S))
    tok = jnp.take(params['tok_emb'], in_idx, axis=0)          # (B, S, D)
    pos = params['pos_emb'][:S][None, :, :]                    # (1, S, D)
    x = (tok + pos).astype(jnp.float32)                        # (B, S, D)

    # Wrapper-side weight prep: fuse Q/K/V, cast matmul weights to bf16, pad LM head
    # to a lane-dense width (extra columns are zeros and sliced off after the kernel).
    wqkv = jnp.concatenate(
        [params['wq'], params['wk'], params['wv']], axis=-1).astype(jnp.bfloat16)   # (L, D, 3D)
    wo = params['wo'].astype(jnp.bfloat16)
    w1 = params['w1'].astype(jnp.bfloat16)
    w2 = params['w2'].astype(jnp.bfloat16)
    wout = jnp.zeros((D, Vp), jnp.bfloat16).at[:, :V].set(
        params['wout'].astype(jnp.bfloat16))

    def full(shape):
        # whole-array block, constant index map (weights stay resident across the grid)
        return pl.BlockSpec(shape, lambda b, _n=len(shape): (0,) * _n)

    in_specs = [
        pl.BlockSpec((None, S, D), lambda b: (b, 0, 0)),   # x, one batch row per step
        full((L, 1, D)), full((L, 1, D)),                  # ln1 gamma/beta
        full((L, D, 3 * D)),                               # fused Wqkv
        full((L, D, D)), full((L, 1, D)),                  # Wo, bo
        full((L, 1, D)), full((L, 1, D)),                  # ln2 gamma/beta
        full((L, D, Dff)), full((L, 1, Dff)),              # W1, b1
        full((L, Dff, D)), full((L, 1, D)),                # W2, b2
        full((1, D)), full((1, D)),                        # final norm gamma/beta
        full((D, Vp)),                                     # padded LM head
    ]
    out_spec = pl.BlockSpec((None, S, Vp), lambda b: (b, 0, 0))

    kernel = functools.partial(gpt_kernel, n_layers=L, n_heads=H)
    logits_padded = pl.pallas_call(
        kernel,
        out_shape=jax.ShapeDtypeStruct((B, S, Vp), jnp.float32),
        grid_spec=pltpu.PrefetchScalarGridSpec(
            num_scalar_prefetch=0,
            grid=(B,),
            in_specs=in_specs,
            out_specs=out_spec,
            scratch_shapes=[pltpu.VMEM((S, D), jnp.float32)],   # per-layer ctx buffer
        ),
        compiler_params=pltpu.CompilerParams(dimension_semantics=("parallel",)),
    )(x,
      params['ln1_g'], params['ln1_b'],
      wqkv, wo, params['bo'],
      params['ln2_g'], params['ln2_b'],
      w1, params['b1'], w2, params['b2'],
      params['lnf_g'], params['lnf_b'], wout)

    return logits_padded[:, :, :V]


# ----------------------------- pure-JAX reference ----------------------------

def _ref_single(x, params, cfg):
    L, H = cfg['n_layers'], cfg['n_heads']
    S, D = x.shape
    Dh = D // H
    scale = 1.0 / math.sqrt(Dh)
    row = lax.broadcasted_iota(jnp.int32, (S, S), 0)
    col = lax.broadcasted_iota(jnp.int32, (S, S), 1)
    causal = col > row
    for l in range(L):
        sc = x
        xn = _layer_norm(x, params['ln1_g'][l], params['ln1_b'][l])
        q = xn @ params['wq'][l]; k = xn @ params['wk'][l]; v = xn @ params['wv'][l]
        heads = []
        for h in range(H):
            qh, kh, vh = (t[:, h * Dh:(h + 1) * Dh] for t in (q, k, v))
            s = jnp.where(causal, -jnp.inf, qh @ kh.T * scale)
            p = jax.nn.softmax(s, axis=-1)
            heads.append(p @ vh)
        x = sc + jnp.concatenate(heads, -1) @ params['wo'][l] + params['bo'][l]
        sc = x
        xn = _layer_norm(x, params['ln2_g'][l], params['ln2_b'][l])
        x = sc + _gelu_tanh(xn @ params['w1'][l] + params['b1'][l]) @ params['w2'][l] + params['b2'][l]
    x = _layer_norm(x, params['lnf_g'], params['lnf_b'])
    return x @ params['wout']


def gpt_reference(in_idx, params, cfg):
    S = in_idx.shape[1]
    x = jnp.take(params['tok_emb'], in_idx, axis=0) + params['pos_emb'][:S][None]
    return jax.vmap(lambda xb: _ref_single(xb, params, cfg))(x.astype(jnp.float32))


# ------------------------------------ main ------------------------------------

if __name__ == "__main__":
    cfg = CFG
    key = jax.random.PRNGKey(0)
    pkey, ikey = jax.random.split(key)
    params = init_params(pkey, cfg)

    B, S = 2, 8  # seq_len <= context_length
    in_idx = jax.random.randint(ikey, (B, S), 0, cfg['vocab_size'], dtype=jnp.int32)

    logits = gpt_forward(in_idx, params, cfg)
    logits = jax.block_until_ready(logits)

    ref = gpt_reference(in_idx, params, cfg)   # f32 reference
    assert logits.shape == (B, S, cfg['vocab_size']), logits.shape
    err = float(jnp.max(jnp.abs(logits - ref)))
    # bf16 MXU inputs + approx reciprocal -> small numeric drift vs the pure-f32 reference;
    # structural bugs would produce errors on the order of the logit scale (~0.1+).
    assert err < 3e-2, f"max abs err {err}"

    print("KERNEL_OK")
</pallas_src>

<mosaic_0001>
module attributes {stable_mosaic.version = 11 : i64} {
  func.func @gpt_kernel(%arg0: i32, %arg1: memref<1x8x32xf32, #tpu.memory_space<vmem>>, %arg2: memref<2x1x32xf32, #tpu.memory_space<vmem>>, %arg3: memref<2x1x32xf32, #tpu.memory_space<vmem>>, %arg4: memref<2x32x96xbf16, #tpu.memory_space<vmem>>, %arg5: memref<2x32x32xbf16, #tpu.memory_space<vmem>>, %arg6: memref<2x1x32xf32, #tpu.memory_space<vmem>>, %arg7: memref<2x1x32xf32, #tpu.memory_space<vmem>>, %arg8: memref<2x1x32xf32, #tpu.memory_space<vmem>>, %arg9: memref<2x32x128xbf16, #tpu.memory_space<vmem>>, %arg10: memref<2x1x128xf32, #tpu.memory_space<vmem>>, %arg11: memref<2x128x32xbf16, #tpu.memory_space<vmem>>, %arg12: memref<2x1x32xf32, #tpu.memory_space<vmem>>, %arg13: memref<1x32xf32, #tpu.memory_space<vmem>>, %arg14: memref<1x32xf32, #tpu.memory_space<vmem>>, %arg15: memref<32x128xbf16, #tpu.memory_space<vmem>>, %arg16: memref<1x8x128xf32, #tpu.memory_space<vmem>>, %arg17: memref<8x32xf32, #tpu.memory_space<vmem>>) attributes {dimension_semantics = [#tpu.dimension_semantics<parallel>], iteration_bounds = array<i64: 2>, scalar_prefetch = 0 : i64, scratch_operands = 1 : i64, tpu.core_type = #tpu.core_type<tc>, window_params = [{transform_indices = @transform_0, window_bounds = array<i64: 1, 8, 32>}, {pipeline_mode = #tpu.pipeline_mode<synchronous>, transform_indices = @transform_1, window_bounds = array<i64: 2, 1, 32>}, {pipeline_mode = #tpu.pipeline_mode<synchronous>, transform_indices = @transform_2, window_bounds = array<i64: 2, 1, 32>}, {pipeline_mode = #tpu.pipeline_mode<synchronous>, transform_indices = @transform_3, window_bounds = array<i64: 2, 32, 96>}, {pipeline_mode = #tpu.pipeline_mode<synchronous>, transform_indices = @transform_4, window_bounds = array<i64: 2, 32, 32>}, {pipeline_mode = #tpu.pipeline_mode<synchronous>, transform_indices = @transform_5, window_bounds = array<i64: 2, 1, 32>}, {pipeline_mode = #tpu.pipeline_mode<synchronous>, transform_indices = @transform_6, window_bounds = array<i64: 2, 1, 32>}, {pipeline_mode = #tpu.pipeline_mode<synchronous>, transform_indices = @transform_7, window_bounds = array<i64: 2, 1, 32>}, {pipeline_mode = #tpu.pipeline_mode<synchronous>, transform_indices = @transform_8, window_bounds = array<i64: 2, 32, 128>}, {pipeline_mode = #tpu.pipeline_mode<synchronous>, transform_indices = @transform_9, window_bounds = array<i64: 2, 1, 128>}, {pipeline_mode = #tpu.pipeline_mode<synchronous>, transform_indices = @transform_10, window_bounds = array<i64: 2, 128, 32>}, {pipeline_mode = #tpu.pipeline_mode<synchronous>, transform_indices = @transform_11, window_bounds = array<i64: 2, 1, 32>}, {pipeline_mode = #tpu.pipeline_mode<synchronous>, transform_indices = @transform_12, window_bounds = array<i64: 1, 32>}, {pipeline_mode = #tpu.pipeline_mode<synchronous>, transform_indices = @transform_13, window_bounds = array<i64: 1, 32>}, {pipeline_mode = #tpu.pipeline_mode<synchronous>, transform_indices = @transform_14, window_bounds = array<i64: 32, 128>}, {transform_indices = @transform_15, window_bounds = array<i64: 1, 8, 128>}]} {
    %0 = tpu.iota {dimensions = array<i32: 0>} : vector<8x8xi32>
    %1 = tpu.iota {dimensions = array<i32: 1>} : vector<8x8xi32>
    %2 = arith.cmpi sgt, %1, %0 : vector<8x8xi32>
    %cst = arith.constant -1.000000e+30 : f32
    %cst_0 = arith.constant 0.000000e+00 : f32
    %3 = vector.broadcast %cst : f32 to vector<8x8xf32>
    %4 = vector.broadcast %cst_0 : f32 to vector<8x8xf32>
    %5 = arith.select %2, %3, %4 : vector<8x8xi1>, vector<8x8xf32>
    %c0 = arith.constant 0 : index
    %c0_1 = arith.constant 0 : index
    %c0_2 = arith.constant 0 : index
    %6 = vector.load %arg1[%c0, %c0_1, %c0_2] : memref<1x8x32xf32, #tpu.memory_space<vmem>>, vector<1x8x32xf32>
    %7 = vector.shape_cast %6 : vector<1x8x32xf32> to vector<8x32xf32>
    %c0_3 = arith.constant 0 : index
    %c0_4 = arith.constant 0 : index
    %c0_5 = arith.constant 0 : index
    %8 = vector.load %arg2[%c0_3, %c0_4, %c0_5] : memref<2x1x32xf32, #tpu.memory_space<vmem>>, vector<1x1x32xf32>
    %9 = vector.shape_cast %8 : vector<1x1x32xf32> to vector<1x32xf32>
    %c0_6 = arith.constant 0 : index
    %c0_7 = arith.constant 0 : index
    %c0_8 = arith.constant 0 : index
    %10 = vector.load %arg3[%c0_6, %c0_7, %c0_8] : memref<2x1x32xf32, #tpu.memory_space<vmem>>, vector<1x1x32xf32>
    %11 = vector.shape_cast %10 : vector<1x1x32xf32> to vector<1x32xf32>
    %cst_9 = arith.constant dense<0.000000e+00> : vector<8xf32>
    %12 = vector.multi_reduction <add>, %7, %cst_9 [1] : vector<8x32xf32> to vector<8xf32>
    %13 = vector.shape_cast %12 : vector<8xf32> to vector<8x1xf32>
    %cst_10 = arith.constant 3.200000e+01 : f32
    %14 = vector.broadcast %cst_10 : f32 to vector<8x1xf32>
    %15 = arith.divf %13, %14 : vector<8x1xf32>
    %16 = vector.broadcast %15 : vector<8x1xf32> to vector<8x32xf32>
    %17 = arith.subf %7, %16 : vector<8x32xf32>
    %18 = arith.mulf %17, %17 : vector<8x32xf32>
    %cst_11 = arith.constant dense<0.000000e+00> : vector<8xf32>
    %19 = vector.multi_reduction <add>, %18, %cst_11 [1] : vector<8x32xf32> to vector<8xf32>
    %20 = vector.shape_cast %19 : vector<8xf32> to vector<8x1xf32>
    %cst_12 = arith.constant 3.200000e+01 : f32
    %21 = vector.broadcast %cst_12 : f32 to vector<8x1xf32>
    %22 = arith.divf %20, %21 : vector<8x1xf32>
    %23 = vector.broadcast %15 : vector<8x1xf32> to vector<8x32xf32>
    %24 = arith.subf %7, %23 : vector<8x32xf32>
    %cst_13 = arith.constant 9.99999974E-6 : f32
    %25 = vector.broadcast %cst_13 : f32 to vector<8x1xf32>
    %26 = arith.addf %22, %25 : vector<8x1xf32>
    %27 = math.rsqrt %26 : vector<8x1xf32>
    %28 = vector.broadcast %27 : vector<8x1xf32> to vector<8x32xf32>
    %29 = arith.mulf %24, %28 : vector<8x32xf32>
    %30 = vector.broadcast %9 : vector<1x32xf32> to vector<8x32xf32>
    %31 = arith.mulf %29, %30 : vector<8x32xf32>
    %32 = vector.broadcast %11 : vector<1x32xf32> to vector<8x32xf32>
    %33 = arith.addf %31, %32 : vector<8x32xf32>
    %34 = arith.truncf %33 : vector<8x32xf32> to vector<8x32xbf16>
    %c0_14 = arith.constant 0 : index
    %c0_15 = arith.constant 0 : index
    %c0_16 = arith.constant 0 : index
    %35 = vector.load %arg4[%c0_14, %c0_15, %c0_16] : memref<2x32x96xbf16, #tpu.memory_space<vmem>>, vector<1x32x96xbf16>
    %36 = vector.shape_cast %35 : vector<1x32x96xbf16> to vector<32x96xbf16>
    %cst_17 = arith.constant dense<0.000000e+00> : vector<8x96xf32>
    %37 = tpu.matmul %34, %36, %cst_17 {dimension_numbers = #tpu.dot_dimension_numbers<[1], [0], [0], [1], [0, 0, 1, 1], [], []>} : vector<8x32xbf16>, vector<32x96xbf16>, vector<8x96xf32> -> vector<8x96xf32>
    %38 = vector.extract_strided_slice %37 {offsets = [0, 0], sizes = [8, 8], strides = [1, 1]} : vector<8x96xf32> to vector<8x8xf32>
    %39 = vector.extract_strided_slice %37 {offsets = [0, 32], sizes = [8, 8], strides = [1, 1]} : vector<8x96xf32> to vector<8x8xf32>
    %40 = vector.extract_strided_slice %37 {offsets = [0, 64], sizes = [8, 8], strides = [1, 1]} : vector<8x96xf32> to vector<8x8xf32>
    %41 = arith.truncf %38 : vector<8x8xf32> to vector<8x8xbf16>
    %42 = tpu.transpose %39, [1, 0] : vector<8x8xf32> -> vector<8x8xf32>
    %43 = arith.truncf %42 : vector<8x8xf32> to vector<8x8xbf16>
    %cst_18 = arith.constant dense<0.000000e+00> : vector<8x8xf32>
    %44 = tpu.matmul %41, %43, %cst_18 {dimension_numbers = #tpu.dot_dimension_numbers<[1], [0], [0], [1], [0, 0, 1, 1], [], []>} : vector<8x8xbf16>, vector<8x8xbf16>, vector<8x8xf32> -> vector<8x8xf32>
    %cst_19 = arith.constant 0.353553385 : f32
    %45 = vector.broadcast %cst_19 : f32 to vector<8x8xf32>
    %46 = arith.mulf %44, %45 : vector<8x8xf32>
    %47 = arith.addf %46, %5 : vector<8x8xf32>
    %cst_20 = arith.constant dense<0xFF800000> : vector<8xf32>
    %48 = vector.multi_reduction <maximumf>, %47, %cst_20 [1] : vector<8x8xf32> to vector<8xf32>
    %49 = vector.shape_cast %48 : vector<8xf32> to vector<8x1xf32>
    %50 = vector.broadcast %49 : vector<8x1xf32> to vector<8x8xf32>
    %51 = arith.subf %47, %50 : vector<8x8xf32>
    %52 = math.exp %51 : vector<8x8xf32>
    %cst_21 = arith.constant dense<0.000000e+00> : vector<8xf32>
    %53 = vector.multi_reduction <add>, %52, %cst_21 [1] : vector<8x8xf32> to vector<8xf32>
    %54 = vector.shape_cast %53 : vector<8xf32> to vector<8x1xf32>
    %55 = tpu.reciprocal %54 {approx = true} : vector<8x1xf32> -> vector<8x1xf32>
    %56 = vector.broadcast %55 : vector<8x1xf32> to vector<8x8xf32>
    %57 = arith.mulf %52, %56 : vector<8x8xf32>
    %58 = arith.truncf %57 : vector<8x8xf32> to vector<8x8xbf16>
    %59 = arith.truncf %40 : vector<8x8xf32> to vector<8x8xbf16>
    %cst_22 = arith.constant dense<0.000000e+00> : vector<8x8xf32>
    %60 = tpu.matmul %58, %59, %cst_22 {dimension_numbers = #tpu.dot_dimension_numbers<[1], [0], [0], [1], [0, 0, 1, 1], [], []>} : vector<8x8xbf16>, vector<8x8xbf16>, vector<8x8xf32> -> vector<8x8xf32>
    %c0_23 = arith.constant 0 : index
    %c0_24 = arith.constant 0 : index
    %61 = vector.load %arg17[%c0_23, %c0_24] : memref<8x32xf32, #tpu.memory_space<vmem>>, vector<8x8xf32>
    tpu.vector_store %arg17[%c0_23, %c0_24], %60 {strides = array<i32>} : memref<8x32xf32, #tpu.memory_space<vmem>>, vector<8x8xf32>,
    %62 = vector.extract_strided_slice %37 {offsets = [0, 8], sizes = [8, 8], strides = [1, 1]} : vector<8x96xf32> to vector<8x8xf32>
    %63 = vector.extract_strided_slice %37 {offsets = [0, 40], sizes = [8, 8], strides = [1, 1]} : vector<8x96xf32> to vector<8x8xf32>
    %64 = vector.extract_strided_slice %37 {offsets = [0, 72], sizes = [8, 8], strides = [1, 1]} : vector<8x96xf32> to vector<8x8xf32>
    %65 = arith.truncf %62 : vector<8x8xf32> to vector<8x8xbf16>
    %66 = tpu.transpose %63, [1, 0] : vector<8x8xf32> -> vector<8x8xf32>
    %67 = arith.truncf %66 : vector<8x8xf32> to vector<8x8xbf16>
    %cst_25 = arith.constant dense<0.000000e+00> : vector<8x8xf32>
    %68 = tpu.matmul %65, %67, %cst_25 {dimension_numbers = #tpu.dot_dimension_numbers<[1], [0], [0], [1], [0, 0, 1, 1], [], []>} : vector<8x8xbf16>, vector<8x8xbf16>, vector<8x8xf32> -> vector<8x8xf32>
    %cst_26 = arith.constant 0.353553385 : f32
    %69 = vector.broadcast %cst_26 : f32 to vector<8x8xf32>
    %70 = arith.mulf %68, %69 : vector<8x8xf32>
    %71 = arith.addf %70, %5 : vector<8x8xf32>
    %cst_27 = arith.constant dense<0xFF800000> : vector<8xf32>
    %72 = vector.multi_reduction <maximumf>, %71, %cst_27 [1] : vector<8x8xf32> to vector<8xf32>
    %73 = vector.shape_cast %72 : vector<8xf32> to vector<8x1xf32>
    %74 = vector.broadcast %73 : vector<8x1xf32> to vector<8x8xf32>
    %75 = arith.subf %71, %74 : vector<8x8xf32>
    %76 = math.exp %75 : vector<8x8xf32>
    %cst_28 = arith.constant dense<0.000000e+00> : vector<8xf32>
    %77 = vector.multi_reduction <add>, %76, %cst_28 [1] : vector<8x8xf32> to vector<8xf32>
    %78 = vector.shape_cast %77 : vector<8xf32> to vector<8x1xf32>
    %79 = tpu.reciprocal %78 {approx = true} : vector<8x1xf32> -> vector<8x1xf32>
    %80 = vector.broadcast %79 : vector<8x1xf32> to vector<8x8xf32>
    %81 = arith.mulf %76, %80 : vector<8x8xf32>
    %82 = arith.truncf %81 : vector<8x8xf32> to vector<8x8xbf16>
    %83 = arith.truncf %64 : vector<8x8xf32> to vector<8x8xbf16>
    %cst_29 = arith.constant dense<0.000000e+00> : vector<8x8xf32>
    %84 = tpu.matmul %82, %83, %cst_29 {dimension_numbers = #tpu.dot_dimension_numbers<[1], [0], [0], [1], [0, 0, 1, 1], [], []>} : vector<8x8xbf16>, vector<8x8xbf16>, vector<8x8xf32> -> vector<8x8xf32>
    %c0_30 = arith.constant 0 : index
    %c8 = arith.constant 8 : index
    %85 = vector.load %arg17[%c0_30, %c8] : memref<8x32xf32, #tpu.memory_space<vmem>>, vector<8x8xf32>
    tpu.vector_store %arg17[%c0_30, %c8], %84 {strides = array<i32>} : memref<8x32xf32, #tpu.memory_space<vmem>>, vector<8x8xf32>,
    %86 = vector.extract_strided_slice %37 {offsets = [0, 16], sizes = [8, 8], strides = [1, 1]} : vector<8x96xf32> to vector<8x8xf32>
    %87 = vector.extract_strided_slice %37 {offsets = [0, 48], sizes = [8, 8], strides = [1, 1]} : vector<8x96xf32> to vector<8x8xf32>
    %88 = vector.extract_strided_slice %37 {offsets = [0, 80], sizes = [8, 8], strides = [1, 1]} : vector<8x96xf32> to vector<8x8xf32>
    %89 = arith.truncf %86 : vector<8x8xf32> to vector<8x8xbf16>
    %90 = tpu.transpose %87, [1, 0] : vector<8x8xf32> -> vector<8x8xf32>
    %91 = arith.truncf %90 : vector<8x8xf32> to vector<8x8xbf16>
    %cst_31 = arith.constant dense<0.000000e+00> : vector<8x8xf32>
    %92 = tpu.matmul %89, %91, %cst_31 {dimension_numbers = #tpu.dot_dimension_numbers<[1], [0], [0], [1], [0, 0, 1, 1], [], []>} : vector<8x8xbf16>, vector<8x8xbf16>, vector<8x8xf32> -> vector<8x8xf32>
    %cst_32 = arith.constant 0.353553385 : f32
    %93 = vector.broadcast %cst_32 : f32 to vector<8x8xf32>
    %94 = arith.mulf %92, %93 : vector<8x8xf32>
    %95 = arith.addf %94, %5 : vector<8x8xf32>
    %cst_33 = arith.constant dense<0xFF800000> : vector<8xf32>
    %96 = vector.multi_reduction <maximumf>, %95, %cst_33 [1] : vector<8x8xf32> to vector<8xf32>
    %97 = vector.shape_cast %96 : vector<8xf32> to vector<8x1xf32>
    %98 = vector.broadcast %97 : vector<8x1xf32> to vector<8x8xf32>
    %99 = arith.subf %95, %98 : vector<8x8xf32>
    %100 = math.exp %99 : vector<8x8xf32>
    %cst_34 = arith.constant dense<0.000000e+00> : vector<8xf32>
    %101 = vector.multi_reduction <add>, %100, %cst_34 [1] : vector<8x8xf32> to vector<8xf32>
    %102 = vector.shape_cast %101 : vector<8xf32> to vector<8x1xf32>
    %103 = tpu.reciprocal %102 {approx = true} : vector<8x1xf32> -> vector<8x1xf32>
    %104 = vector.broadcast %103 : vector<8x1xf32> to vector<8x8xf32>
    %105 = arith.mulf %100, %104 : vector<8x8xf32>
    %106 = arith.truncf %105 : vector<8x8xf32> to vector<8x8xbf16>
    %107 = arith.truncf %88 : vector<8x8xf32> to vector<8x8xbf16>
    %cst_35 = arith.constant dense<0.000000e+00> : vector<8x8xf32>
    %108 = tpu.matmul %106, %107, %cst_35 {dimension_numbers = #tpu.dot_dimension_numbers<[1], [0], [0], [1], [0, 0, 1, 1], [], []>} : vector<8x8xbf16>, vector<8x8xbf16>, vector<8x8xf32> -> vector<8x8xf32>
    %c0_36 = arith.constant 0 : index
    %c16 = arith.constant 16 : index
    %109 = vector.load %arg17[%c0_36, %c16] : memref<8x32xf32, #tpu.memory_space<vmem>>, vector<8x8xf32>
    tpu.vector_store %arg17[%c0_36, %c16], %108 {strides = array<i32>} : memref<8x32xf32, #tpu.memory_space<vmem>>, vector<8x8xf32>,
    %110 = vector.extract_strided_slice %37 {offsets = [0, 24], sizes = [8, 8], strides = [1, 1]} : vector<8x96xf32> to vector<8x8xf32>
    %111 = vector.extract_strided_slice %37 {offsets = [0, 56], sizes = [8, 8], strides = [1, 1]} : vector<8x96xf32> to vector<8x8xf32>
    %112 = vector.extract_strided_slice %37 {offsets = [0, 88], sizes = [8, 8], strides = [1, 1]} : vector<8x96xf32> to vector<8x8xf32>
    %113 = arith.truncf %110 : vector<8x8xf32> to vector<8x8xbf16>
    %114 = tpu.transpose %111, [1, 0] : vector<8x8xf32> -> vector<8x8xf32>
    %115 = arith.truncf %114 : vector<8x8xf32> to vector<8x8xbf16>
    %cst_37 = arith.constant dense<0.000000e+00> : vector<8x8xf32>
    %116 = tpu.matmul %113, %115, %cst_37 {dimension_numbers = #tpu.dot_dimension_numbers<[1], [0], [0], [1], [0, 0, 1, 1], [], []>} : vector<8x8xbf16>, vector<8x8xbf16>, vector<8x8xf32> -> vector<8x8xf32>
    %cst_38 = arith.constant 0.353553385 : f32
    %117 = vector.broadcast %cst_38 : f32 to vector<8x8xf32>
    %118 = arith.mulf %116, %117 : vector<8x8xf32>
    %119 = arith.addf %118, %5 : vector<8x8xf32>
    %cst_39 = arith.constant dense<0xFF800000> : vector<8xf32>
    %120 = vector.multi_reduction <maximumf>, %119, %cst_39 [1] : vector<8x8xf32> to vector<8xf32>
    %121 = vector.shape_cast %120 : vector<8xf32> to vector<8x1xf32>
    %122 = vector.broadcast %121 : vector<8x1xf32> to vector<8x8xf32>
    %123 = arith.subf %119, %122 : vector<8x8xf32>
    %124 = math.exp %123 : vector<8x8xf32>
    %cst_40 = arith.constant dense<0.000000e+00> : vector<8xf32>
    %125 = vector.multi_reduction <add>, %124, %cst_40 [1] : vector<8x8xf32> to vector<8xf32>
    %126 = vector.shape_cast %125 : vector<8xf32> to vector<8x1xf32>
    %127 = tpu.reciprocal %126 {approx = true} : vector<8x1xf32> -> vector<8x1xf32>
    %128 = vector.broadcast %127 : vector<8x1xf32> to vector<8x8xf32>
    %129 = arith.mulf %124, %128 : vector<8x8xf32>
    %130 = arith.truncf %129 : vector<8x8xf32> to vector<8x8xbf16>
    %131 = arith.truncf %112 : vector<8x8xf32> to vector<8x8xbf16>
    %cst_41 = arith.constant dense<0.000000e+00> : vector<8x8xf32>
    %132 = tpu.matmul %130, %131, %cst_41 {dimension_numbers = #tpu.dot_dimension_numbers<[1], [0], [0], [1], [0, 0, 1, 1], [], []>} : vector<8x8xbf16>, vector<8x8xbf16>, vector<8x8xf32> -> vector<8x8xf32>
    %c0_42 = arith.constant 0 : index
    %c24 = arith.constant 24 : index
    %133 = vector.load %arg17[%c0_42, %c24] : memref<8x32xf32, #tpu.memory_space<vmem>>, vector<8x8xf32>
    tpu.vector_store %arg17[%c0_42, %c24], %132 {strides = array<i32>} : memref<8x32xf32, #tpu.memory_space<vmem>>, vector<8x8xf32>,
    %c0_43 = arith.constant 0 : index
    %c0_44 = arith.constant 0 : index
    %134 = vector.load %arg17[%c0_43, %c0_44] : memref<8x32xf32, #tpu.memory_space<vmem>>, vector<8x32xf32>
    %135 = arith.truncf %134 : vector<8x32xf32> to vector<8x32xbf16>
    %c0_45 = arith.constant 0 : index
    %c0_46 = arith.constant 0 : index
    %c0_47 = arith.constant 0 : index
    %136 = vector.load %arg5[%c0_45, %c0_46, %c0_47] : memref<2x32x32xbf16, #tpu.memory_space<vmem>>, vector<1x32x32xbf16>
    %137 = vector.shape_cast %136 : vector<1x32x32xbf16> to vector<32x32xbf16>
    %cst_48 = arith.constant dense<0.000000e+00> : vector<8x32xf32>
    %138 = tpu.matmul %135, %137, %cst_48 {dimension_numbers = #tpu.dot_dimension_numbers<[1], [0], [0], [1], [0, 0, 1, 1], [], []>} : vector<8x32xbf16>, vector<32x32xbf16>, vector<8x32xf32> -> vector<8x32xf32>
    %c0_49 = arith.constant 0 : index
    %c0_50 = arith.constant 0 : index
    %c0_51 = arith.constant 0 : index
    %139 = vector.load %arg6[%c0_49, %c0_50, %c0_51] : memref<2x1x32xf32, #tpu.memory_space<vmem>>, vector<1x1x32xf32>
    %140 = vector.shape_cast %139 : vector<1x1x32xf32> to vector<1x32xf32>
    %141 = vector.broadcast %140 : vector<1x32xf32> to vector<8x32xf32>
    %142 = arith.addf %138, %141 : vector<8x32xf32>
    %143 = arith.addf %7, %142 : vector<8x32xf32>
    %c0_52 = arith.constant 0 : index
    %c0_53 = arith.constant 0 : index
    %c0_54 = arith.constant 0 : index
    %144 = vector.load %arg7[%c0_52, %c0_53, %c0_54] : memref<2x1x32xf32, #tpu.memory_space<vmem>>, vector<1x1x32xf32>
    %145 = vector.shape_cast %144 : vector<1x1x32xf32> to vector<1x32xf32>
    %c0_55 = arith.constant 0 : index
    %c0_56 = arith.constant 0 : index
    %c0_57 = arith.constant 0 : index
    %146 = vector.load %arg8[%c0_55, %c0_56, %c0_57] : memref<2x1x32xf32, #tpu.memory_space<vmem>>, vector<1x1x32xf32>
    %147 = vector.shape_cast %146 : vector<1x1x32xf32> to vector<1x32xf32>
    %cst_58 = arith.constant dense<0.000000e+00> : vector<8xf32>
    %148 = vector.multi_reduction <add>, %143, %cst_58 [1] : vector<8x32xf32> to vector<8xf32>
    %149 = vector.shape_cast %148 : vector<8xf32> to vector<8x1xf32>
    %cst_59 = arith.constant 3.200000e+01 : f32
    %150 = vector.broadcast %cst_59 : f32 to vector<8x1xf32>
    %151 = arith.divf %149, %150 : vector<8x1xf32>
    %152 = vector.broadcast %151 : vector<8x1xf32> to vector<8x32xf32>
    %153 = arith.subf %143, %152 : vector<8x32xf32>
    %154 = arith.mulf %153, %153 : vector<8x32xf32>
    %cst_60 = arith.constant dense<0.000000e+00> : vector<8xf32>
    %155 = vector.multi_reduction <add>, %154, %cst_60 [1] : vector<8x32xf32> to vector<8xf32>
    %156 = vector.shape_cast %155 : vector<8xf32> to vector<8x1xf32>
    %cst_61 = arith.constant 3.200000e+01 : f32
    %157 = vector.broadcast %cst_61 : f32 to vector<8x1xf32>
    %158 = arith.divf %156, %157 : vector<8x1xf32>
    %159 = vector.broadcast %151 : vector<8x1xf32> to vector<8x32xf32>
    %160 = arith.subf %143, %159 : vector<8x32xf32>
    %cst_62 = arith.constant 9.99999974E-6 : f32
    %161 = vector.broadcast %cst_62 : f32 to vector<8x1xf32>
    %162 = arith.addf %158, %161 : vector<8x1xf32>
    %163 = math.rsqrt %162 : vector<8x1xf32>
    %164 = vector.broadcast %163 : vector<8x1xf32> to vector<8x32xf32>
    %165 = arith.mulf %160, %164 : vector<8x32xf32>
    %166 = vector.broadcast %145 : vector<1x32xf32> to vector<8x32xf32>
    %167 = arith.mulf %165, %166 : vector<8x32xf32>
    %168 = vector.broadcast %147 : vector<1x32xf32> to vector<8x32xf32>
    %169 = arith.addf %167, %168 : vector<8x32xf32>
    %170 = arith.truncf %169 : vector<8x32xf32> to vector<8x32xbf16>
    %c0_63 = arith.constant 0 : index
    %c0_64 = arith.constant 0 : index
    %c0_65 = arith.constant 0 : index
    %171 = vector.load %arg9[%c0_63, %c0_64, %c0_65] : memref<2x32x128xbf16, #tpu.memory_space<vmem>>, vector<1x32x128xbf16>
    %172 = vector.shape_cast %171 : vector<1x32x128xbf16> to vector<32x128xbf16>
    %cst_66 = arith.constant dense<0.000000e+00> : vector<8x128xf32>
    %173 = tpu.matmul %170, %172, %cst_66 {dimension_numbers = #tpu.dot_dimension_numbers<[1], [0], [0], [1], [0, 0, 1, 1], [], []>} : vector<8x32xbf16>, vector<32x128xbf16>, vector<8x128xf32> -> vector<8x128xf32>
    %c0_67 = arith.constant 0 : index
    %c0_68 = arith.constant 0 : index
    %c0_69 = arith.constant 0 : index
    %174 = vector.load %arg10[%c0_67, %c0_68, %c0_69] : memref<2x1x128xf32, #tpu.memory_space<vmem>>, vector<1x1x128xf32>
    %175 = vector.shape_cast %174 : vector<1x1x128xf32> to vector<1x128xf32>
    %176 = vector.broadcast %175 : vector<1x128xf32> to vector<8x128xf32>
    %177 = arith.addf %173, %176 : vector<8x128xf32>
    %cst_70 = arith.constant 5.000000e-01 : f32
    %178 = vector.broadcast %cst_70 : f32 to vector<8x128xf32>
    %179 = arith.mulf %178, %177 : vector<8x128xf32>
    %cst_71 = arith.constant 0.636619746 : f32
    %180 = math.sqrt %cst_71 : f32
    %cst_72 = arith.constant 4.471500e-02 : f32
    %181 = vector.broadcast %cst_72 : f32 to vector<8x128xf32>
    %182 = arith.mulf %181, %177 : vector<8x128xf32>
    %183 = arith.mulf %182, %177 : vector<8x128xf32>
    %184 = arith.mulf %183, %177 : vector<8x128xf32>
    %185 = arith.addf %177, %184 : vector<8x128xf32>
    %186 = vector.broadcast %180 : f32 to vector<8x128xf32>
    %187 = arith.mulf %186, %185 : vector<8x128xf32>
    %188 = math.tanh %187 : vector<8x128xf32>
    %cst_73 = arith.constant 1.000000e+00 : f32
    %189 = vector.broadcast %cst_73 : f32 to vector<8x128xf32>
    %190 = arith.addf %189, %188 : vector<8x128xf32>
    %191 = arith.mulf %179, %190 : vector<8x128xf32>
    %192 = arith.truncf %191 : vector<8x128xf32> to vector<8x128xbf16>
    %c0_74 = arith.constant 0 : index
    %c0_75 = arith.constant 0 : index
    %c0_76 = arith.constant 0 : index
    %193 = vector.load %arg11[%c0_74, %c0_75, %c0_76] : memref<2x128x32xbf16, #tpu.memory_space<vmem>>, vector<1x128x32xbf16>
    %194 = vector.shape_cast %193 : vector<1x128x32xbf16> to vector<128x32xbf16>
    %cst_77 = arith.constant dense<0.000000e+00> : vector<8x32xf32>
    %195 = tpu.matmul %192, %194, %cst_77 {dimension_numbers = #tpu.dot_dimension_numbers<[1], [0], [0], [1], [0, 0, 1, 1], [], []>} : vector<8x128xbf16>, vector<128x32xbf16>, vector<8x32xf32> -> vector<8x32xf32>
    %c0_78 = arith.constant 0 : index
    %c0_79 = arith.constant 0 : index
    %c0_80 = arith.constant 0 : index
    %196 = vector.load %arg12[%c0_78, %c0_79, %c0_80] : memref<2x1x32xf32, #tpu.memory_space<vmem>>, vector<1x1x32xf32>
    %197 = vector.shape_cast %196 : vector<1x1x32xf32> to vector<1x32xf32>
    %198 = vector.broadcast %197 : vector<1x32xf32> to vector<8x32xf32>
    %199 = arith.addf %195, %198 : vector<8x32xf32>
    %200 = arith.addf %143, %199 : vector<8x32xf32>
    %c1 = arith.constant 1 : index
    %c0_81 = arith.constant 0 : index
    %c0_82 = arith.constant 0 : index
    %201 = vector.load %arg2[%c1, %c0_81, %c0_82] : memref<2x1x32xf32, #tpu.memory_space<vmem>>, vector<1x1x32xf32>
    %202 = vector.shape_cast %201 : vector<1x1x32xf32> to vector<1x32xf32>
    %c1_83 = arith.constant 1 : index
    %c0_84 = arith.constant 0 : index
    %c0_85 = arith.constant 0 : index
    %203 = vector.load %arg3[%c1_83, %c0_84, %c0_85] : memref<2x1x32xf32, #tpu.memory_space<vmem>>, vector<1x1x32xf32>
    %204 = vector.shape_cast %203 : vector<1x1x32xf32> to vector<1x32xf32>
    %cst_86 = arith.constant dense<0.000000e+00> : vector<8xf32>
    %205 = vector.multi_reduction <add>, %200, %cst_86 [1] : vector<8x32xf32> to vector<8xf32>
    %206 = vector.shape_cast %205 : vector<8xf32> to vector<8x1xf32>
    %cst_87 = arith.constant 3.200000e+01 : f32
    %207 = vector.broadcast %cst_87 : f32 to vector<8x1xf32>
    %208 = arith.divf %206, %207 : vector<8x1xf32>
    %209 = vector.broadcast %208 : vector<8x1xf32> to vector<8x32xf32>
    %210 = arith.subf %200, %209 : vector<8x32xf32>
    %211 = arith.mulf %210, %210 : vector<8x32xf32>
    %cst_88 = arith.constant dense<0.000000e+00> : vector<8xf32>
    %212 = vector.multi_reduction <add>, %211, %cst_88 [1] : vector<8x32xf32> to vector<8xf32>
    %213 = vector.shape_cast %212 : vector<8xf32> to vector<8x1xf32>
    %cst_89 = arith.constant 3.200000e+01 : f32
    %214 = vector.broadcast %cst_89 : f32 to vector<8x1xf32>
    %215 = arith.divf %213, %214 : vector<8x1xf32>
    %216 = vector.broadcast %208 : vector<8x1xf32> to vector<8x32xf32>
    %217 = arith.subf %200, %216 : vector<8x32xf32>
    %cst_90 = arith.constant 9.99999974E-6 : f32
    %218 = vector.broadcast %cst_90 : f32 to vector<8x1xf32>
    %219 = arith.addf %215, %218 : vector<8x1xf32>
    %220 = math.rsqrt %219 : vector<8x1xf32>
    %221 = vector.broadcast %220 : vector<8x1xf32> to vector<8x32xf32>
    %222 = arith.mulf %217, %221 : vector<8x32xf32>
    %223 = vector.broadcast %202 : vector<1x32xf32> to vector<8x32xf32>
    %224 = arith.mulf %222, %223 : vector<8x32xf32>
    %225 = vector.broadcast %204 : vector<1x32xf32> to vector<8x32xf32>
    %226 = arith.addf %224, %225 : vector<8x32xf32>
    %227 = arith.truncf %226 : vector<8x32xf32> to vector<8x32xbf16>
    %c1_91 = arith.constant 1 : index
    %c0_92 = arith.constant 0 : index
    %c0_93 = arith.constant 0 : index
    %228 = vector.load %arg4[%c1_91, %c0_92, %c0_93] : memref<2x32x96xbf16, #tpu.memory_space<vmem>>, vector<1x32x96xbf16>
    %229 = vector.shape_cast %228 : vector<1x32x96xbf16> to vector<32x96xbf16>
    %cst_94 = arith.constant dense<0.000000e+00> : vector<8x96xf32>
    %230 = tpu.matmul %227, %229, %cst_94 {dimension_numbers = #tpu.dot_dimension_numbers<[1], [0], [0], [1], [0, 0, 1, 1], [], []>} : vector<8x32xbf16>, vector<32x96xbf16>, vector<8x96xf32> -> vector<8x96xf32>
    %231 = vector.extract_strided_slice %230 {offsets = [0, 0], sizes = [8, 8], strides = [1, 1]} : vector<8x96xf32> to vector<8x8xf32>
    %232 = vector.extract_strided_slice %230 {offsets = [0, 32], sizes = [8, 8], strides = [1, 1]} : vector<8x96xf32> to vector<8x8xf32>
    %233 = vector.extract_strided_slice %230 {offsets = [0, 64], sizes = [8, 8], strides = [1, 1]} : vector<8x96xf32> to vector<8x8xf32>
    %234 = arith.truncf %231 : vector<8x8xf32> to vector<8x8xbf16>
    %235 = tpu.transpose %232, [1, 0] : vector<8x8xf32> -> vector<8x8xf32>
    %236 = arith.truncf %235 : vector<8x8xf32> to vector<8x8xbf16>
    %cst_95 = arith.constant dense<0.000000e+00> : vector<8x8xf32>
    %237 = tpu.matmul %234, %236, %cst_95 {dimension_numbers = #tpu.dot_dimension_numbers<[1], [0], [0], [1], [0, 0, 1, 1], [], []>} : vector<8x8xbf16>, vector<8x8xbf16>, vector<8x8xf32> -> vector<8x8xf32>
    %cst_96 = arith.constant 0.353553385 : f32
    %238 = vector.broadcast %cst_96 : f32 to vector<8x8xf32>
    %239 = arith.mulf %237, %238 : vector<8x8xf32>
    %240 = arith.addf %239, %5 : vector<8x8xf32>
    %cst_97 = arith.constant dense<0xFF800000> : vector<8xf32>
    %241 = vector.multi_reduction <maximumf>, %240, %cst_97 [1] : vector<8x8xf32> to vector<8xf32>
    %242 = vector.shape_cast %241 : vector<8xf32> to vector<8x1xf32>
    %243 = vector.broadcast %242 : vector<8x1xf32> to vector<8x8xf32>
    %244 = arith.subf %240, %243 : vector<8x8xf32>
    %245 = math.exp %244 : vector<8x8xf32>
    %cst_98 = arith.constant dense<0.000000e+00> : vector<8xf32>
    %246 = vector.multi_reduction <add>, %245, %cst_98 [1] : vector<8x8xf32> to vector<8xf32>
    %247 = vector.shape_cast %246 : vector<8xf32> to vector<8x1xf32>
    %248 = tpu.reciprocal %247 {approx = true} : vector<8x1xf32> -> vector<8x1xf32>
    %249 = vector.broadcast %248 : vector<8x1xf32> to vector<8x8xf32>
    %250 = arith.mulf %245, %249 : vector<8x8xf32>
    %251 = arith.truncf %250 : vector<8x8xf32> to vector<8x8xbf16>
    %252 = arith.truncf %233 : vector<8x8xf32> to vector<8x8xbf16>
    %cst_99 = arith.constant dense<0.000000e+00> : vector<8x8xf32>
    %253 = tpu.matmul %251, %252, %cst_99 {dimension_numbers = #tpu.dot_dimension_numbers<[1], [0], [0], [1], [0, 0, 1, 1], [], []>} : vector<8x8xbf16>, vector<8x8xbf16>, vector<8x8xf32> -> vector<8x8xf32>
    %c0_100 = arith.constant 0 : index
    %c0_101 = arith.constant 0 : index
    %254 = vector.load %arg17[%c0_100, %c0_101] : memref<8x32xf32, #tpu.memory_space<vmem>>, vector<8x8xf32>
    tpu.vector_store %arg17[%c0_100, %c0_101], %253 {strides = array<i32>} : memref<8x32xf32, #tpu.memory_space<vmem>>, vector<8x8xf32>,
    %255 = vector.extract_strided_slice %230 {offsets = [0, 8], sizes = [8, 8], strides = [1, 1]} : vector<8x96xf32> to vector<8x8xf32>
    %256 = vector.extract_strided_slice %230 {offsets = [0, 40], sizes = [8, 8], strides = [1, 1]} : vector<8x96xf32> to vector<8x8xf32>
    %257 = vector.extract_strided_slice %230 {offsets = [0, 72], sizes = [8, 8], strides = [1, 1]} : vector<8x96xf32> to vector<8x8xf32>
    %258 = arith.truncf %255 : vector<8x8xf32> to vector<8x8xbf16>
    %259 = tpu.transpose %256, [1, 0] : vector<8x8xf32> -> vector<8x8xf32>
    %260 = arith.truncf %259 : vector<8x8xf32> to vector<8x8xbf16>
    %cst_102 = arith.constant dense<0.000000e+00> : vector<8x8xf32>
    %261 = tpu.matmul %258, %260, %cst_102 {dimension_numbers = #tpu.dot_dimension_numbers<[1], [0], [0], [1], [0, 0, 1, 1], [], []>} : vector<8x8xbf16>, vector<8x8xbf16>, vector<8x8xf32> -> vector<8x8xf32>
    %cst_103 = arith.constant 0.353553385 : f32
    %262 = vector.broadcast %cst_103 : f32 to vector<8x8xf32>
    %263 = arith.mulf %261, %262 : vector<8x8xf32>
    %264 = arith.addf %263, %5 : vector<8x8xf32>
    %cst_104 = arith.constant dense<0xFF800000> : vector<8xf32>
    %265 = vector.multi_reduction <maximumf>, %264, %cst_104 [1] : vector<8x8xf32> to vector<8xf32>
    %266 = vector.shape_cast %265 : vector<8xf32> to vector<8x1xf32>
    %267 = vector.broadcast %266 : vector<8x1xf32> to vector<8x8xf32>
    %268 = arith.subf %264, %267 : vector<8x8xf32>
    %269 = math.exp %268 : vector<8x8xf32>
    %cst_105 = arith.constant dense<0.000000e+00> : vector<8xf32>
    %270 = vector.multi_reduction <add>, %269, %cst_105 [1] : vector<8x8xf32> to vector<8xf32>
    %271 = vector.shape_cast %270 : vector<8xf32> to vector<8x1xf32>
    %272 = tpu.reciprocal %271 {approx = true} : vector<8x1xf32> -> vector<8x1xf32>
    %273 = vector.broadcast %272 : vector<8x1xf32> to vector<8x8xf32>
    %274 = arith.mulf %269, %273 : vector<8x8xf32>
    %275 = arith.truncf %274 : vector<8x8xf32> to vector<8x8xbf16>
    %276 = arith.truncf %257 : vector<8x8xf32> to vector<8x8xbf16>
    %cst_106 = arith.constant dense<0.000000e+00> : vector<8x8xf32>
    %277 = tpu.matmul %275, %276, %cst_106 {dimension_numbers = #tpu.dot_dimension_numbers<[1], [0], [0], [1], [0, 0, 1, 1], [], []>} : vector<8x8xbf16>, vector<8x8xbf16>, vector<8x8xf32> -> vector<8x8xf32>
    %c0_107 = arith.constant 0 : index
    %c8_108 = arith.constant 8 : index
    %278 = vector.load %arg17[%c0_107, %c8_108] : memref<8x32xf32, #tpu.memory_space<vmem>>, vector<8x8xf32>
    tpu.vector_store %arg17[%c0_107, %c8_108], %277 {strides = array<i32>} : memref<8x32xf32, #tpu.memory_space<vmem>>, vector<8x8xf32>,
    %279 = vector.extract_strided_slice %230 {offsets = [0, 16], sizes = [8, 8], strides = [1, 1]} : vector<8x96xf32> to vector<8x8xf32>
    %280 = vector.extract_strided_slice %230 {offsets = [0, 48], sizes = [8, 8], strides = [1, 1]} : vector<8x96xf32> to vector<8x8xf32>
    %281 = vector.extract_strided_slice %230 {offsets = [0, 80], sizes = [8, 8], strides = [1, 1]} : vector<8x96xf32> to vector<8x8xf32>
    %282 = arith.truncf %279 : vector<8x8xf32> to vector<8x8xbf16>
    %283 = tpu.transpose %280, [1, 0] : vector<8x8xf32> -> vector<8x8xf32>
    %284 = arith.truncf %283 : vector<8x8xf32> to vector<8x8xbf16>
    %cst_109 = arith.constant dense<0.000000e+00> : vector<8x8xf32>
    %285 = tpu.matmul %282, %284, %cst_109 {dimension_numbers = #tpu.dot_dimension_numbers<[1], [0], [0], [1], [0, 0, 1, 1], [], []>} : vector<8x8xbf16>, vector<8x8xbf16>, vector<8x8xf32> -> vector<8x8xf32>
    %cst_110 = arith.constant 0.353553385 : f32
    %286 = vector.broadcast %cst_110 : f32 to vector<8x8xf32>
    %287 = arith.mulf %285, %286 : vector<8x8xf32>
    %288 = arith.addf %287, %5 : vector<8x8xf32>
    %cst_111 = arith.constant dense<0xFF800000> : vector<8xf32>
    %289 = vector.multi_reduction <maximumf>, %288, %cst_111 [1] : vector<8x8xf32> to vector<8xf32>
    %290 = vector.shape_cast %289 : vector<8xf32> to vector<8x1xf32>
    %291 = vector.broadcast %290 : vector<8x1xf32> to vector<8x8xf32>
    %292 = arith.subf %288, %291 : vector<8x8xf32>
    %293 = math.exp %292 : vector<8x8xf32>
    %cst_112 = arith.constant dense<0.000000e+00> : vector<8xf32>
    %294 = vector.multi_reduction <add>, %293, %cst_112 [1] : vector<8x8xf32> to vector<8xf32>
    %295 = vector.shape_cast %294 : vector<8xf32> to vector<8x1xf32>
    %296 = tpu.reciprocal %295 {approx = true} : vector<8x1xf32> -> vector<8x1xf32>
    %297 = vector.broadcast %296 : vector<8x1xf32> to vector<8x8xf32>
    %298 = arith.mulf %293, %297 : vector<8x8xf32>
    %299 = arith.truncf %298 : vector<8x8xf32> to vector<8x8xbf16>
    %300 = arith.truncf %281 : vector<8x8xf32> to vector<8x8xbf16>
    %cst_113 = arith.constant dense<0.000000e+00> : vector<8x8xf32>
    %301 = tpu.matmul %299, %300, %cst_113 {dimension_numbers = #tpu.dot_dimension_numbers<[1], [0], [0], [1], [0, 0, 1, 1], [], []>} : vector<8x8xbf16>, vector<8x8xbf16>, vector<8x8xf32> -> vector<8x8xf32>
    %c0_114 = arith.constant 0 : index
    %c16_115 = arith.constant 16 : index
    %302 = vector.load %arg17[%c0_114, %c16_115] : memref<8x32xf32, #tpu.memory_space<vmem>>, vector<8x8xf32>
    tpu.vector_store %arg17[%c0_114, %c16_115], %301 {strides = array<i32>} : memref<8x32xf32, #tpu.memory_space<vmem>>, vector<8x8xf32>,
    %303 = vector.extract_strided_slice %230 {offsets = [0, 24], sizes = [8, 8], strides = [1, 1]} : vector<8x96xf32> to vector<8x8xf32>
    %304 = vector.extract_strided_slice %230 {offsets = [0, 56], sizes = [8, 8], strides = [1, 1]} : vector<8x96xf32> to vector<8x8xf32>
    %305 = vector.extract_strided_slice %230 {offsets = [0, 88], sizes = [8, 8], strides = [1, 1]} : vector<8x96xf32> to vector<8x8xf32>
    %306 = arith.truncf %303 : vector<8x8xf32> to vector<8x8xbf16>
    %307 = tpu.transpose %304, [1, 0] : vector<8x8xf32> -> vector<8x8xf32>
    %308 = arith.truncf %307 : vector<8x8xf32> to vector<8x8xbf16>
    %cst_116 = arith.constant dense<0.000000e+00> : vector<8x8xf32>
    %309 = tpu.matmul %306, %308, %cst_116 {dimension_numbers = #tpu.dot_dimension_numbers<[1], [0], [0], [1], [0, 0, 1, 1], [], []>} : vector<8x8xbf16>, vector<8x8xbf16>, vector<8x8xf32> -> vector<8x8xf32>
    %cst_117 = arith.constant 0.353553385 : f32
    %310 = vector.broadcast %cst_117 : f32 to vector<8x8xf32>
    %311 = arith.mulf %309, %310 : vector<8x8xf32>
    %312 = arith.addf %311, %5 : vector<8x8xf32>
    %cst_118 = arith.constant dense<0xFF800000> : vector<8xf32>
    %313 = vector.multi_reduction <maximumf>, %312, %cst_118 [1] : vector<8x8xf32> to vector<8xf32>
    %314 = vector.shape_cast %313 : vector<8xf32> to vector<8x1xf32>
    %315 = vector.broadcast %314 : vector<8x1xf32> to vector<8x8xf32>
    %316 = arith.subf %312, %315 : vector<8x8xf32>
    %317 = math.exp %316 : vector<8x8xf32>
    %cst_119 = arith.constant dense<0.000000e+00> : vector<8xf32>
    %318 = vector.multi_reduction <add>, %317, %cst_119 [1] : vector<8x8xf32> to vector<8xf32>
    %319 = vector.shape_cast %318 : vector<8xf32> to vector<8x1xf32>
    %320 = tpu.reciprocal %319 {approx = true} : vector<8x1xf32> -> vector<8x1xf32>
    %321 = vector.broadcast %320 : vector<8x1xf32> to vector<8x8xf32>
    %322 = arith.mulf %317, %321 : vector<8x8xf32>
    %323 = arith.truncf %322 : vector<8x8xf32> to vector<8x8xbf16>
    %324 = arith.truncf %305 : vector<8x8xf32> to vector<8x8xbf16>
    %cst_120 = arith.constant dense<0.000000e+00> : vector<8x8xf32>
    %325 = tpu.matmul %323, %324, %cst_120 {dimension_numbers = #tpu.dot_dimension_numbers<[1], [0], [0], [1], [0, 0, 1, 1], [], []>} : vector<8x8xbf16>, vector<8x8xbf16>, vector<8x8xf32> -> vector<8x8xf32>
    %c0_121 = arith.constant 0 : index
    %c24_122 = arith.constant 24 : index
    %326 = vector.load %arg17[%c0_121, %c24_122] : memref<8x32xf32, #tpu.memory_space<vmem>>, vector<8x8xf32>
    tpu.vector_store %arg17[%c0_121, %c24_122], %325 {strides = array<i32>} : memref<8x32xf32, #tpu.memory_space<vmem>>, vector<8x8xf32>,
    %c0_123 = arith.constant 0 : index
    %c0_124 = arith.constant 0 : index
    %327 = vector.load %arg17[%c0_123, %c0_124] : memref<8x32xf32, #tpu.memory_space<vmem>>, vector<8x32xf32>
    %328 = arith.truncf %327 : vector<8x32xf32> to vector<8x32xbf16>
    %c1_125 = arith.constant 1 : index
    %c0_126 = arith.constant 0 : index
    %c0_127 = arith.constant 0 : index
    %329 = vector.load %arg5[%c1_125, %c0_126, %c0_127] : memref<2x32x32xbf16, #tpu.memory_space<vmem>>, vector<1x32x32xbf16>
    %330 = vector.shape_cast %329 : vector<1x32x32xbf16> to vector<32x32xbf16>
    %cst_128 = arith.constant dense<0.000000e+00> : vector<8x32xf32>
    %331 = tpu.matmul %328, %330, %cst_128 {dimension_numbers = #tpu.dot_dimension_numbers<[1], [0], [0], [1], [0, 0, 1, 1], [], []>} : vector<8x32xbf16>, vector<32x32xbf16>, vector<8x32xf32> -> vector<8x32xf32>
    %c1_129 = arith.constant 1 : index
    %c0_130 = arith.constant 0 : index
    %c0_131 = arith.constant 0 : index
    %332 = vector.load %arg6[%c1_129, %c0_130, %c0_131] : memref<2x1x32xf32, #tpu.memory_space<vmem>>, vector<1x1x32xf32>
    %333 = vector.shape_cast %332 : vector<1x1x32xf32> to vector<1x32xf32>
    %334 = vector.broadcast %333 : vector<1x32xf32> to vector<8x32xf32>
    %335 = arith.addf %331, %334 : vector<8x32xf32>
    %336 = arith.addf %200, %335 : vector<8x32xf32>
    %c1_132 = arith.constant 1 : index
    %c0_133 = arith.constant 0 : index
    %c0_134 = arith.constant 0 : index
    %337 = vector.load %arg7[%c1_132, %c0_133, %c0_134] : memref<2x1x32xf32, #tpu.memory_space<vmem>>, vector<1x1x32xf32>
    %338 = vector.shape_cast %337 : vector<1x1x32xf32> to vector<1x32xf32>
    %c1_135 = arith.constant 1 : index
    %c0_136 = arith.constant 0 : index
    %c0_137 = arith.constant 0 : index
    %339 = vector.load %arg8[%c1_135, %c0_136, %c0_137] : memref<2x1x32xf32, #tpu.memory_space<vmem>>, vector<1x1x32xf32>
    %340 = vector.shape_cast %339 : vector<1x1x32xf32> to vector<1x32xf32>
    %cst_138 = arith.constant dense<0.000000e+00> : vector<8xf32>
    %341 = vector.multi_reduction <add>, %336, %cst_138 [1] : vector<8x32xf32> to vector<8xf32>
    %342 = vector.shape_cast %341 : vector<8xf32> to vector<8x1xf32>
    %cst_139 = arith.constant 3.200000e+01 : f32
    %343 = vector.broadcast %cst_139 : f32 to vector<8x1xf32>
    %344 = arith.divf %342, %343 : vector<8x1xf32>
    %345 = vector.broadcast %344 : vector<8x1xf32> to vector<8x32xf32>
    %346 = arith.subf %336, %345 : vector<8x32xf32>
    %347 = arith.mulf %346, %346 : vector<8x32xf32>
    %cst_140 = arith.constant dense<0.000000e+00> : vector<8xf32>
    %348 = vector.multi_reduction <add>, %347, %cst_140 [1] : vector<8x32xf32> to vector<8xf32>
    %349 = vector.shape_cast %348 : vector<8xf32> to vector<8x1xf32>
    %cst_141 = arith.constant 3.200000e+01 : f32
    %350 = vector.broadcast %cst_141 : f32 to vector<8x1xf32>
    %351 = arith.divf %349, %350 : vector<8x1xf32>
    %352 = vector.broadcast %344 : vector<8x1xf32> to vector<8x32xf32>
    %353 = arith.subf %336, %352 : vector<8x32xf32>
    %cst_142 = arith.constant 9.99999974E-6 : f32
    %354 = vector.broadcast %cst_142 : f32 to vector<8x1xf32>
    %355 = arith.addf %351, %354 : vector<8x1xf32>
    %356 = math.rsqrt %355 : vector<8x1xf32>
    %357 = vector.broadcast %356 : vector<8x1xf32> to vector<8x32xf32>
    %358 = arith.mulf %353, %357 : vector<8x32xf32>
    %359 = vector.broadcast %338 : vector<1x32xf32> to vector<8x32xf32>
    %360 = arith.mulf %358, %359 : vector<8x32xf32>
    %361 = vector.broadcast %340 : vector<1x32xf32> to vector<8x32xf32>
    %362 = arith.addf %360, %361 : vector<8x32xf32>
    %363 = arith.truncf %362 : vector<8x32xf32> to vector<8x32xbf16>
    %c1_143 = arith.constant 1 : index
    %c0_144 = arith.constant 0 : index
    %c0_145 = arith.constant 0 : index
    %364 = vector.load %arg9[%c1_143, %c0_144, %c0_145] : memref<2x32x128xbf16, #tpu.memory_space<vmem>>, vector<1x32x128xbf16>
    %365 = vector.shape_cast %364 : vector<1x32x128xbf16> to vector<32x128xbf16>
    %cst_146 = arith.constant dense<0.000000e+00> : vector<8x128xf32>
    %366 = tpu.matmul %363, %365, %cst_146 {dimension_numbers = #tpu.dot_dimension_numbers<[1], [0], [0], [1], [0, 0, 1, 1], [], []>} : vector<8x32xbf16>, vector<32x128xbf16>, vector<8x128xf32> -> vector<8x128xf32>
    %c1_147 = arith.constant 1 : index
    %c0_148 = arith.constant 0 : index
    %c0_149 = arith.constant 0 : index
    %367 = vector.load %arg10[%c1_147, %c0_148, %c0_149] : memref<2x1x128xf32, #tpu.memory_space<vmem>>, vector<1x1x128xf32>
    %368 = vector.shape_cast %367 : vector<1x1x128xf32> to vector<1x128xf32>
    %369 = vector.broadcast %368 : vector<1x128xf32> to vector<8x128xf32>
    %370 = arith.addf %366, %369 : vector<8x128xf32>
    %cst_150 = arith.constant 5.000000e-01 : f32
    %371 = vector.broadcast %cst_150 : f32 to vector<8x128xf32>
    %372 = arith.mulf %371, %370 : vector<8x128xf32>
    %cst_151 = arith.constant 0.636619746 : f32
    %373 = math.sqrt %cst_151 : f32
    %cst_152 = arith.constant 4.471500e-02 : f32
    %374 = vector.broadcast %cst_152 : f32 to vector<8x128xf32>
    %375 = arith.mulf %374, %370 : vector<8x128xf32>
    %376 = arith.mulf %375, %370 : vector<8x128xf32>
    %377 = arith.mulf %376, %370 : vector<8x128xf32>
    %378 = arith.addf %370, %377 : vector<8x128xf32>
    %379 = vector.broadcast %373 : f32 to vector<8x128xf32>
    %380 = arith.mulf %379, %378 : vector<8x128xf32>
    %381 = math.tanh %380 : vector<8x128xf32>
    %cst_153 = arith.constant 1.000000e+00 : f32
    %382 = vector.broadcast %cst_153 : f32 to vector<8x128xf32>
    %383 = arith.addf %382, %381 : vector<8x128xf32>
    %384 = arith.mulf %372, %383 : vector<8x128xf32>
    %385 = arith.truncf %384 : vector<8x128xf32> to vector<8x128xbf16>
    %c1_154 = arith.constant 1 : index
    %c0_155 = arith.constant 0 : index
    %c0_156 = arith.constant 0 : index
    %386 = vector.load %arg11[%c1_154, %c0_155, %c0_156] : memref<2x128x32xbf16, #tpu.memory_space<vmem>>, vector<1x128x32xbf16>
    %387 = vector.shape_cast %386 : vector<1x128x32xbf16> to vector<128x32xbf16>
    %cst_157 = arith.constant dense<0.000000e+00> : vector<8x32xf32>
    %388 = tpu.matmul %385, %387, %cst_157 {dimension_numbers = #tpu.dot_dimension_numbers<[1], [0], [0], [1], [0, 0, 1, 1], [], []>} : vector<8x128xbf16>, vector<128x32xbf16>, vector<8x32xf32> -> vector<8x32xf32>
    %c1_158 = arith.constant 1 : index
    %c0_159 = arith.constant 0 : index
    %c0_160 = arith.constant 0 : index
    %389 = vector.load %arg12[%c1_158, %c0_159, %c0_160] : memref<2x1x32xf32, #tpu.memory_space<vmem>>, vector<1x1x32xf32>
    %390 = vector.shape_cast %389 : vector<1x1x32xf32> to vector<1x32xf32>
    %391 = vector.broadcast %390 : vector<1x32xf32> to vector<8x32xf32>
    %392 = arith.addf %388, %391 : vector<8x32xf32>
    %393 = arith.addf %336, %392 : vector<8x32xf32>
    %c0_161 = arith.constant 0 : index
    %c0_162 = arith.constant 0 : index
    %394 = vector.load %arg13[%c0_161, %c0_162] : memref<1x32xf32, #tpu.memory_space<vmem>>, vector<1x32xf32>
    %c0_163 = arith.constant 0 : index
    %c0_164 = arith.constant 0 : index
    %395 = vector.load %arg14[%c0_163, %c0_164] : memref<1x32xf32, #tpu.memory_space<vmem>>, vector<1x32xf32>
    %cst_165 = arith.constant dense<0.000000e+00> : vector<8xf32>
    %396 = vector.multi_reduction <add>, %393, %cst_165 [1] : vector<8x32xf32> to vector<8xf32>
    %397 = vector.shape_cast %396 : vector<8xf32> to vector<8x1xf32>
    %cst_166 = arith.constant 3.200000e+01 : f32
    %398 = vector.broadcast %cst_166 : f32 to vector<8x1xf32>
    %399 = arith.divf %397, %398 : vector<8x1xf32>
    %400 = vector.broadcast %399 : vector<8x1xf32> to vector<8x32xf32>
    %401 = arith.subf %393, %400 : vector<8x32xf32>
    %402 = arith.mulf %401, %401 : vector<8x32xf32>
    %cst_167 = arith.constant dense<0.000000e+00> : vector<8xf32>
    %403 = vector.multi_reduction <add>, %402, %cst_167 [1] : vector<8x32xf32> to vector<8xf32>
    %404 = vector.shape_cast %403 : vector<8xf32> to vector<8x1xf32>
    %cst_168 = arith.constant 3.200000e+01 : f32
    %405 = vector.broadcast %cst_168 : f32 to vector<8x1xf32>
    %406 = arith.divf %404, %405 : vector<8x1xf32>
    %407 = vector.broadcast %399 : vector<8x1xf32> to vector<8x32xf32>
    %408 = arith.subf %393, %407 : vector<8x32xf32>
    %cst_169 = arith.constant 9.99999974E-6 : f32
    %409 = vector.broadcast %cst_169 : f32 to vector<8x1xf32>
    %410 = arith.addf %406, %409 : vector<8x1xf32>
    %411 = math.rsqrt %410 : vector<8x1xf32>
    %412 = vector.broadcast %411 : vector<8x1xf32> to vector<8x32xf32>
    %413 = arith.mulf %408, %412 : vector<8x32xf32>
    %414 = vector.broadcast %394 : vector<1x32xf32> to vector<8x32xf32>
    %415 = arith.mulf %413, %414 : vector<8x32xf32>
    %416 = vector.broadcast %395 : vector<1x32xf32> to vector<8x32xf32>
    %417 = arith.addf %415, %416 : vector<8x32xf32>
    %418 = arith.truncf %417 : vector<8x32xf32> to vector<8x32xbf16>
    %c0_170 = arith.constant 0 : index
    %c0_171 = arith.constant 0 : index
    %419 = vector.load %arg15[%c0_170, %c0_171] : memref<32x128xbf16, #tpu.memory_space<vmem>>, vector<32x128xbf16>
    %cst_172 = arith.constant dense<0.000000e+00> : vector<8x128xf32>
    %420 = tpu.matmul %418, %419, %cst_172 {dimension_numbers = #tpu.dot_dimension_numbers<[1], [0], [0], [1], [0, 0, 1, 1], [], []>} : vector<8x32xbf16>, vector<32x128xbf16>, vector<8x128xf32> -> vector<8x128xf32>
    %c0_173 = arith.constant 0 : index
    %c0_174 = arith.constant 0 : index
    %c0_175 = arith.constant 0 : index
    %421 = vector.load %arg16[%c0_173, %c0_174, %c0_175] : memref<1x8x128xf32, #tpu.memory_space<vmem>>, vector<1x8x128xf32>
    %422 = vector.shape_cast %421 : vector<1x8x128xf32> to vector<8x128xf32>
    %423 = vector.shape_cast %420 : vector<8x128xf32> to vector<1x8x128xf32>
    tpu.vector_store %arg16[%c0_173, %c0_174, %c0_175], %423 {strides = array<i32>} : memref<1x8x128xf32, #tpu.memory_space<vmem>>, vector<1x8x128xf32>,
    return
  }
  func.func @transform_0(%arg0: i32) -> (i32, i32, i32) {
    %c0_i32 = arith.constant 0 : i32
    %c0_i32_0 = arith.constant 0 : i32
    %c0_i32_1 = arith.constant 0 : i32
    return %arg0, %c0_i32, %c0_i32_0 : i32, i32, i32
  }
  func.func @transform_1(%arg0: i32) -> (i32, i32, i32) {
    %c0_i32 = arith.constant 0 : i32
    %c0_i32_0 = arith.constant 0 : i32
    %c0_i32_1 = arith.constant 0 : i32
    %c0_i32_2 = arith.constant 0 : i32
    return %c0_i32, %c0_i32_0, %c0_i32_1 : i32, i32, i32
  }
  func.func @transform_2(%arg0: i32) -> (i32, i32, i32) {
    %c0_i32 = arith.constant 0 : i32
    %c0_i32_0 = arith.constant 0 : i32
    %c0_i32_1 = arith.constant 0 : i32
    %c0_i32_2 = arith.constant 0 : i32
    return %c0_i32, %c0_i32_0, %c0_i32_1 : i32, i32, i32
  }
  func.func @transform_3(%arg0: i32) -> (i32, i32, i32) {
    %c0_i32 = arith.constant 0 : i32
    %c0_i32_0 = arith.constant 0 : i32
    %c0_i32_1 = arith.constant 0 : i32
    %c0_i32_2 = arith.constant 0 : i32
    return %c0_i32, %c0_i32_0, %c0_i32_1 : i32, i32, i32
  }
  func.func @transform_4(%arg0: i32) -> (i32, i32, i32) {
    %c0_i32 = arith.constant 0 : i32
    %c0_i32_0 = arith.constant 0 : i32
    %c0_i32_1 = arith.constant 0 : i32
    %c0_i32_2 = arith.constant 0 : i32
    return %c0_i32, %c0_i32_0, %c0_i32_1 : i32, i32, i32
  }
  func.func @transform_5(%arg0: i32) -> (i32, i32, i32) {
    %c0_i32 = arith.constant 0 : i32
    %c0_i32_0 = arith.constant 0 : i32
    %c0_i32_1 = arith.constant 0 : i32
    %c0_i32_2 = arith.constant 0 : i32
    return %c0_i32, %c0_i32_0, %c0_i32_1 : i32, i32, i32
  }
  func.func @transform_6(%arg0: i32) -> (i32, i32, i32) {
    %c0_i32 = arith.constant 0 : i32
    %c0_i32_0 = arith.constant 0 : i32
    %c0_i32_1 = arith.constant 0 : i32
    %c0_i32_2 = arith.constant 0 : i32
    return %c0_i32, %c0_i32_0, %c0_i32_1 : i32, i32, i32
  }
  func.func @transform_7(%arg0: i32) -> (i32, i32, i32) {
    %c0_i32 = arith.constant 0 : i32
    %c0_i32_0 = arith.constant 0 : i32
    %c0_i32_1 = arith.constant 0 : i32
    %c0_i32_2 = arith.constant 0 : i32
    return %c0_i32, %c0_i32_0, %c0_i32_1 : i32, i32, i32
  }
  func.func @transform_8(%arg0: i32) -> (i32, i32, i32) {
    %c0_i32 = arith.constant 0 : i32
    %c0_i32_0 = arith.constant 0 : i32
    %c0_i32_1 = arith.constant 0 : i32
    %c0_i32_2 = arith.constant 0 : i32
    return %c0_i32, %c0_i32_0, %c0_i32_1 : i32, i32, i32
  }
  func.func @transform_9(%arg0: i32) -> (i32, i32, i32) {
    %c0_i32 = arith.constant 0 : i32
    %c0_i32_0 = arith.constant 0 : i32
    %c0_i32_1 = arith.constant 0 : i32
    %c0_i32_2 = arith.constant 0 : i32
    return %c0_i32, %c0_i32_0, %c0_i32_1 : i32, i32, i32
  }
  func.func @transform_10(%arg0: i32) -> (i32, i32, i32) {
    %c0_i32 = arith.constant 0 : i32
    %c0_i32_0 = arith.constant 0 : i32
    %c0_i32_1 = arith.constant 0 : i32
    %c0_i32_2 = arith.constant 0 : i32
    return %c0_i32, %c0_i32_0, %c0_i32_1 : i32, i32, i32
  }
  func.func @transform_11(%arg0: i32) -> (i32, i32, i32) {
    %c0_i32 = arith.constant 0 : i32
    %c0_i32_0 = arith.constant 0 : i32
    %c0_i32_1 = arith.constant 0 : i32
    %c0_i32_2 = arith.constant 0 : i32
    return %c0_i32, %c0_i32_0, %c0_i32_1 : i32, i32, i32
  }
  func.func @transform_12(%arg0: i32) -> (i32, i32) {
    %c0_i32 = arith.constant 0 : i32
    %c0_i32_0 = arith.constant 0 : i32
    %c0_i32_1 = arith.constant 0 : i32
    return %c0_i32, %c0_i32_0 : i32, i32
  }
  func.func @transform_13(%arg0: i32) -> (i32, i32) {
    %c0_i32 = arith.constant 0 : i32
    %c0_i32_0 = arith.constant 0 : i32
    %c0_i32_1 = arith.constant 0 : i32
    return %c0_i32, %c0_i32_0 : i32, i32
  }
  func.func @transform_14(%arg0: i32) -> (i32, i32) {
    %c0_i32 = arith.constant 0 : i32
    %c0_i32_0 = arith.constant 0 : i32
    %c0_i32_1 = arith.constant 0 : i32
    return %c0_i32, %c0_i32_0 : i32, i32
  }
  func.func @transform_15(%arg0: i32) -> (i32, i32, i32) {
    %c0_i32 = arith.constant 0 : i32
    %c0_i32_0 = arith.constant 0 : i32
    %c0_i32_1 = arith.constant 0 : i32
    return %arg0, %c0_i32, %c0_i32_0 : i32, i32, i32
  }
}

</mosaic_0001>

<bundles_post_ra>
// kernel: tpu_custom_call.1
= control target key start
LH: loop header
LB: loop body
LE: loop exit
PB: predicated region body
PF: predicated region fallthrough
CT: control target
= control target key end

     0   :  { %s3795_s0 = inlined_call_operand.vmem [shape: f32[2,8,32], index: 0, kind: input, shape index: {}]   ;;  %s3796_s1 = inlined_call_operand.vmem [shape: f32[2,1,32], index: 1, kind: input, shape index: {}]   ;;  %s3797_s2 = inlined_call_operand.vmem [shape: f32[2,1,32], index: 2, kind: input, shape index: {}]   ;;  %s3798_s3 = inlined_call_operand.vmem [shape: bf16[2,32,96], index: 3, kind: input, shape index: {}]   ;;  %s3799_s4 = inlined_call_operand.vmem [shape: bf16[2,32,32], index: 4, kind: input, shape index: {}]   ;;  %s3800_s5 = inlined_call_operand.vmem [shape: f32[2,1,32], index: 5, kind: input, shape index: {}]   ;;  %s3801_s6 = inlined_call_operand.vmem [shape: f32[2,1,32], index: 6, kind: input, shape index: {}]   ;;  %s3802_s7 = inlined_call_operand.vmem [shape: f32[2,1,32], index: 7, kind: input, shape index: {}]   ;;  %s3803_s8 = inlined_call_operand.vmem [shape: bf16[2,32,128], index: 8, kind: input, shape index: {}]   ;;  %s3804_s9 = inlined_call_operand.vmem [shape: f32[2,1,128], index: 9, kind: input, shape index: {}]   ;;  %s3805_s10 = inlined_call_operand.vmem [shape: bf16[2,128,32], index: 10, kind: input, shape index: {}]   ;;  %s3806_s11 = inlined_call_operand.vmem [shape: f32[2,1,32], index: 11, kind: input, shape index: {}]   ;;  %s3807_s12 = inlined_call_operand.vmem [shape: f32[1,32], index: 12, kind: input, shape index: {}]   ;;  %s3808_s13 = inlined_call_operand.vmem [shape: f32[1,32], index: 13, kind: input, shape index: {}]   ;;  %s3809_s14 = inlined_call_operand.vmem [shape: bf16[32,128], index: 14, kind: input, shape index: {}]   ;;  %s3810_s15 = inlined_call_operand.hbm [shape: f32[2,8,128], index: 15, kind: output, shape index: {}]  }
   0x1   :  { %3825 = sst [smem:[#allocation7_spill]] %s3795_s0 }
   0x2   :  { %3826 = sst [smem:[#allocation8_spill]] %s3796_s1 }
   0x3   :  { %3827 = sst [smem:[#allocation9_spill]] %s3797_s2 }
   0x4   :  { %3828 = sst [smem:[#allocation10_spill]] %s3798_s3 }
   0x5   :  { %20 = vsyncpa [#allocation4], 0 }
   0x6   :  { %22 = vsyncpa [#allocation4 + $0x1], 0  ;;  %s3309_s18 = smov 0   ;;  %s3311_s19 = smov 0  }
   0x7   :  { %s3313_s20 = smov 0   ;;  %s3315_s21 = smov 0  }
   0x8 LB: > { %s3330_s22 = sadd.s32 4294967295, %s3210_s21   ;;  %s2633_s23 = sadd.s32 4294967294, %s3210_s21   ;;  %s3210_s21 = sphi %s3315_s21, %s3854_s21   ;;  %s3206_s20 = sphi %s3313_s20, %s3853_s20   ;;  %s3202_s19 = sphi %s3311_s19, %s3852_s19   ;;  %s3198_s18 = sphi %s3309_s18, %s3851_s18  }
   0x9   : > { %s3334_s24 = sadd.s32 1, %s3210_s21   ;;  %s355_s25 = sadd.s32 1, %s3206_s20 }
   0xa   : > { %s352_s26 = ssub.s32 %s3210_s21, %s3334_s24  ;;  %p365_p0 = scmp.ne.s32.totalorder %s3206_s20, %s3202_s19 }
   0xb   : > { %p353_p1 = scmp.eq.s32.totalorder %s352_s26, 0  ;;  %p366_p2 = scmp.eq.s32.totalorder %s3330_s22, 1 }
   0xc   : > { %p371_p3 = scmp.ne.s32.totalorder %s3202_s19, %s3198_s18  ;;  %p372_p4 = scmp.eq.s32.totalorder %s2633_s23, 1 }
   0xd   : > { %s3345_s27 = scalar_select %p353_p1, %s3206_s20, %s355_s25  }
   0xe   : > { %p3347_p5 = por %p366_p2, %p365_p0  ;;  %p3351_p6 = por %p372_p4, %p371_p3 }
   0xf   : > { %3829 = sst [smem:[#allocation6_spill]] %s3345_s27  ;;  %p2636_p7 = scmp.ge.s32.totalorder %s3210_s21, 1 }
  0x10   : > { %p439_p8 = scmp.lt.s32.totalorder %s3210_s21, 3 }
  0x12   : > { %p440_p9 = pnand %p2636_p7, %p439_p8 }
  0x13   : > { %p486_p10 = scmp.lt.s32.totalorder (!%p440_p9), %s3330_s22, 1  ;;  %vm500_vm0 = vcmask (!%p440_p9), 261120   ;;  %s3832_s0 = sld [smem:[#allocation7_spill]] (!%p440_p9)  ;;  %v3212_v8 = vmov (!%p440_p9), 0.0   ;;  %vm3213_vm1 = vmmov (!%p440_p9), 0   ;;  %vm631_vm2 = vcmask (!%p440_p9), 1043456  }
  0x14   : > { %443 = sbr.rel (%p440_p9) target bundleno = 6533 (0x1985), region = 80  ;;  %s3833_s3 = sld [smem:[#allocation10_spill]] (!%p440_p9)  ;;  %2818 = vmatprep.subr.bf16.mxu0 (!%p440_p9), %v3212_v8  ;;  %2822 = vmatprep.mubr.msk.bf16.mxu0 (!%p440_p9), %vm3213_vm1, %v3212_v8  ;;  %vm627_vm3 = vcmask (!%p440_p9), 64512   ;;  %v491_v46 = vlaneseq (!%p440_p9)  ;;  %vm889_vm5 = vcmask (!%p440_p9), 130112   ;;  %vm1041_vm6 = vcmask (!%p440_p9), 195712  }
  0x15   : > { %2832 = vmatprep.subr.bf16.mxu1 (!%p440_p9), %v3212_v8  ;;  %2834 = vmatprep.mubr.msk.bf16.mxu1 (!%p440_p9), %vm3213_vm1, %v3212_v8  ;;  %s3834_s1 = sld [smem:[#allocation8_spill]] (!%p440_p9)  ;;  %s3835_s2 = sld [smem:[#allocation9_spill]] (!%p440_p9)  ;;  %vm1193_vm7 = vcmask (!%p440_p9), 261312  }
  0x16   : > { %s3821_s17 = smov (!%p440_p9), 96   ;;  %s3820_s23 = smov (!%p440_p9), 88   ;;  %v492_v47 = vshrl.u32 (!%p440_p9), %v491_v46, 7  ;;  %v494_v48 = vand.u32 (!%p440_p9), 127, %v491_v46 }
  0x17   : > { %s3814_s26 = smov (!%p440_p9), 72   ;;  %s3840_s27 = smov (!%p440_p9), 72  }
  0x18   : > { %vm495_vm4 = vcmp.gt.s32.totalorder (!%p440_p9), %v494_v48, %v492_v47 }
  0x19   : > { %v3425_v50 = vsel (!%p440_p9), %vm495_vm4, -1e+30, %v3212_v8 }
  0x1a   : > { %v3072_v7 = vld [vmem:[%s3833_s3] sm:$0xff] (!%p440_p9)   ;;  %v3073_v9 = vld [vmem:[%s3833_s3 + $0x8] sm:$0xff] (!%p440_p9)  }
  0x1b   : > { %s487_s30 = scalar_select %p486_p10, %s3330_s22, 1  ;;  %2819 = vmatpush3.bf16.msra.mxu0 %v3072_v7  ;;  %v2639_v14 = vld [vmem:[%s3834_s1] ss:$0 sm:$0xff] }
  0x1c   : > { %2820 = vmatprep.subr.bf16.mxu0 %v3212_v8  ;;  %v2640_v16 = vld [vmem:[%s3835_s2] ss:$0 sm:$0xff] }
  0x1d   : > { %s2638_s16 = sshll.u32 %s487_s30, 3  ;;  %s3813_s30 = smov 120  }
  0x1e   : > { %s489_s25 = scalar_lea.vmem %s3832_s0, %s2638_s16  ;;  %s3811_s16 = smov 80  }
  0x1f   : > { %v3362_v0 = vld [vmem:[%s489_s25] sm:$0xff]  ;;  %2821 = vmatpush3.bf16.msra.mxu0 %v3073_v9  ;;  %s3815_s25 = smov 104   ;;  %s3839_s0 = smov 80  }
  0x20   : > { %v501_v1 = vsel %vm500_vm0, %v3362_v0, 0.0  ;;  %2826 = vmatprep.subr.bf16.mxu0 %v3212_v8 }
  0x21   : > { %502 = vadd.xlane.f32.xlu0 %v501_v1 }
  0xae   : > { %v503_v2 = vpop.xlane.xlu0 %502 }
  0xaf   : > { %v505_v3 = vmul.f32 0.03125, %v503_v2 }
  0xb1   : > { %v506_v4 = vsub.f32 %v3362_v0, %v505_v3 }
  0xb3   : > { %v507_v5 = vmul.f32 %v506_v4, %v506_v4 }
  0xb5   : > { %v508_v6 = vsel %vm500_vm0, %v507_v5, 0.0 }
  0xb6   : > { %509 = vadd.xlane.f32.xlu0 %v508_v6 }
 0x143   : > { %v510_v10 = vpop.xlane.xlu0 %509 }
 0x144   : > { %v511_v11 = vmul.f32 0.03125, %v510_v10 }
 0x146   : > { %v512_v12 = vadd.f32 1e-05, %v511_v11 }
 0x148   : > { %3102 = vrsqrt.f32 %v512_v12 }
 0x152   : > { %v3103_v13 = vpop.eup %3102 }
 0x153   : > { %v514_v15 = vmul.f32 %v3103_v13, %v506_v4 }
 0x155   : > { %v521_v17 = vmul.f32 %v2639_v14, %v514_v15 }
 0x157   : > { %v528_v18 = vadd.f32 %v2640_v16, %v521_v17 }
 0x159   : > { %v529_v19 = vpack.c.bf16 %v528_v18, %v528_v18 }
 0x15b   : > { %2823 = vmatmul.mubr.msk.bf16.vlgmr.msra.gmra.mrb[0].mxu0 %vm500_vm0, %v529_v19 }
 0x15c   : > { %2828 = vmatprep.mubr.msk.bf16.mxu0 %vm3213_vm1, %v3212_v8 }
 0x22e   : > { %v583_v20 = vpop.f32.mrb[0].mxu0 }
 0x22f   : > { %891 = vrot.lane.b32.xlu0 %v583_v20, %s3811_s16  ;;  %591 = vrot.lane.b32.xlu1 %v583_v20, %s3821_s17  ;;  %v2824_v21 = vpop.f32.mrb[1].mxu0  ;;  %v3393_v23 = vpack.c.bf16 %v583_v20, %v583_v20  ;;  %s3812_s16 = smov 112   ;;  %s3823_s17 = smov 16  }
 0x230   : > { %v586_v22 = vpop.f32.mrb[2].mxu0 }
 0x231   : > { %v2825_v24 = vpop.f32.mrb[3].mxu0 }
 0x233   : > { %739 = vrot.lane.b32.xlu1 %v583_v20, %s3820_s23  ;;  %1079 = vrot.lane.b32.xlu0 %v3393_v23, %s3815_s25  ;;  %s3818_s25 = smov 48   ;;  %s3838_s23 = smov 104  }
 0x237   : > { %1043 = vrot.lane.b32.xlu1 %v583_v20, %s3814_s26  ;;  %s3816_s26 = smov 40  }
 0x23b   : > { %775 = vrot.lane.b32.xlu1 %v3393_v23, %s3813_s30  ;;  %s3819_s30 = smov 64  }
 0x23f   : > { %927 = vrot.lane.b32.xlu1 %v3393_v23, %s3812_s16  ;;  %s3817_s16 = smov 56  }
 0x2a1   : > { %v892_v25 = vpop.permute.xlu0 %891  ;;  %v592_v26 = vpop.permute.xlu1 %591 }
 0x2a2   : > { %894 = vxpose.xlu0.b32.start.end [1/1] (short) (narrow) %v892_v25, 8 }
 0x2a5   : > { %v740_v27 = vpop.permute.xlu1 %739  ;;  %v1080_v36 = vpop.permute.xlu0 %1079 }
 0x2a6   : > { %v3065_v28 = vpack.i.bf16 %v740_v27, %v592_v26 }
 0x2a8   : > { %3066 = vxpose.xlu1.b32.start.end [1/1] (short) (narrow) %v3065_v28, 8 }
 0x2a9   : > { %v1044_v29 = vpop.permute.xlu1 %1043 }
 0x2ac   : > { %1046 = vxpose.xlu1.b32.start.end [1/1] (short) (narrow) %v1044_v29, 8 }
 0x2ad   : > { %v776_v30 = vpop.permute.xlu1 %775 }
 0x2b1   : > { %v928_v31 = vpop.permute.xlu1 %927 }
 0x322   : > { %v910_v39 = vpop.trf.xlu0 }
 0x323   : > { %v926_v41 = vpack.c.bf16 %v910_v39, %v910_v39 }
 0x325   : > { %v933_v42 = vsel %vm631_vm2, %v926_v41, 0 }
 0x328   : > { %v3067_v32 = vpop.trf.xlu1 }
 0x329   : > { %v3071_v33 = vunpack.i.h.bf16 %v3067_v32  ;;  %v3068_v34 = vunpack.i.l.bf16 %v3067_v32 }
 0x32b   : > { %v626_v35 = vpack.c.bf16 %v3068_v34, %v3068_v34  ;;  %v774_v38 = vpack.c.bf16 %v3071_v33, %v3071_v33 }
 0x32c   : > { %v1062_v43 = vpop.trf.xlu1 }
 0x32d   : > { %v633_v37 = vsel %vm631_vm2, %v626_v35, 0  ;;  %v781_v40 = vsel %vm631_vm2, %v774_v38, 0  ;;  %v1078_v44 = vpack.c.bf16 %v1062_v43, %v1062_v43 }
 0x32e   : > { %2827 = vmatpush3.bf16.msra.mxu0 %v633_v37 }
 0x32f   : > { %2838 = vmatprep.subr.bf16.mxu0 %v3212_v8  ;;  %v1085_v45 = vsel %vm631_vm2, %v1078_v44, 0 }
 0x331   : > { %2829 = vmatmul.mubr.msk.bf16.vlgmr.msra.gmra.mrb[4].mxu0 %vm627_vm3, %v3393_v23 }
 0x332   : > { %2839 = vmatpush3.bf16.msra.mxu0 %v781_v40  ;;  %2840 = vmatprep.mubr.msk.bf16.mxu0 %vm3213_vm1, %v3212_v8 }
 0x333   : > { %2850 = vmatprep.subr.bf16.mxu0 %v3212_v8 }
 0x339   : > { %2841 = vmatmul.mubr.msk.bf16.vlgmr.msra.gmra.mrb[8].mxu0 %vm627_vm3, %v776_v30 }
 0x33a   : > { %2851 = vmatpush3.bf16.msra.mxu0 %v933_v42  ;;  %2852 = vmatprep.mubr.msk.bf16.mxu0 %vm3213_vm1, %v3212_v8 }
 0x33b   : > { %2862 = vmatprep.subr.bf16.mxu0 %v3212_v8 }
 0x341   : > { %2853 = vmatmul.mubr.msk.bf16.vlgmr.msra.gmra.mrb[12].mxu0 %vm627_vm3, %v928_v31 }
 0x342   : > { %2863 = vmatpush3.bf16.msra.mxu0 %v1085_v45  ;;  %2864 = vmatprep.mubr.msk.bf16.mxu0 %vm3213_vm1, %v3212_v8 }
 0x343   : > { %2874 = vmatprep.subr.bf16.mxu0 %v3212_v8 }
 0x349   : > { %2865 = vmatmul.mubr.msk.bf16.vlgmr.msra.gmra.mrb[16].mxu0 %vm627_vm3, %v1080_v36 }
 0x34a   : > { %2878 = vmatprep.mubr.msk.bf16.mxu0 %vm3213_vm1, %v3212_v8 }
 0x404   : > { %v669_v49 = vpop.f32.mrb[4].mxu0 }
 0x405   : > { %v675_v51 = vmul.f32 0.35355338, %v669_v49  ;;  %v2830_v52 = vpop.f32.mrb[5].mxu0 }
 0x406   : > { %v672_v53 = vpop.f32.mrb[6].mxu0 }
 0x407   : > { %v2831_v54 = vpop.f32.mrb[7].mxu0  ;;  %v676_v55 = vadd.f32 %v675_v51, %v3425_v50 }
 0x409   : > { %v677_v56 = vsel %vm627_vm3, %v676_v55, -inf }
 0x40a   : > { %678 = vmax.xlane.f32.xlu0 %v677_v56 }
 0x40c   : > { %v817_v57 = vpop.f32.mrb[8].mxu0 }
 0x40d   : > { %v823_v58 = vmul.f32 0.35355338, %v817_v57  ;;  %v2842_v59 = vpop.f32.mrb[9].mxu0 }
 0x40e   : > { %v820_v60 = vpop.f32.mrb[10].mxu0 }
 0x40f   : > { %v2843_v61 = vpop.f32.mrb[11].mxu0  ;;  %v824_v62 = vadd.f32 %v823_v58, %v3425_v50 }
 0x411   : > { %v825_v63 = vsel %vm627_vm3, %v824_v62, -inf }
 0x412   : > { %826 = vmax.xlane.f32.xlu1 %v825_v63 }
 0x414   : > { %v969_v1 = vpop.f32.mrb[12].mxu0 }
 0x415   : > { %v975_v2 = vmul.f32 0.35355338, %v969_v1  ;;  %v2854_v3 = vpop.f32.mrb[13].mxu0 }
 0x416   : > { %v972_v4 = vpop.f32.mrb[14].mxu0 }
 0x417   : > { %v2855_v5 = vpop.f32.mrb[15].mxu0  ;;  %v976_v6 = vadd.f32 %v975_v2, %v3425_v50 }
 0x419   : > { %v977_v7 = vsel %vm627_vm3, %v976_v6, -inf }
 0x41a   : > { %978 = vmax.xlane.f32.xlu1 %v977_v7  ;;  %v3075_v7 = vld [vmem:[%s3799_s4 + $0x8] sm:$0xff]  }
 0x41c   : > { %v1121_v9 = vpop.f32.mrb[16].mxu0 }
 0x41d   : > { %v1127_v10 = vmul.f32 0.35355338, %v1121_v9  ;;  %v2866_v11 = vpop.f32.mrb[17].mxu0 }
 0x41e   : > { %v1124_v12 = vpop.f32.mrb[18].mxu0 }
 0x41f   : > { %v2867_v13 = vpop.f32.mrb[19].mxu0  ;;  %v1128_v14 = vadd.f32 %v1127_v10, %v3425_v50 }
 0x421   : > { %v1129_v15 = vsel %vm627_vm3, %v1128_v14, -inf }
 0x422   : > { %1130 = vmax.xlane.f32.xlu1 %v1129_v15 }
 0x497   : > { %v679_v16 = vpop.xlane.xlu0 %678 }
 0x498   : > { %v680_v17 = vsub.f32 %v676_v55, %v679_v16 }
 0x49a   : > { %v681_v18 = vmul.f32 1.442695, %v680_v17 }
 0x49c   : > { %3104 = vpow2.f32 %v681_v18 }
 0x49f   : > { %v827_v19 = vpop.xlane.xlu1 %826 }
 0x4a0   : > { %v828_v20 = vsub.f32 %v824_v62, %v827_v19 }
 0x4a2   : > { %v829_v21 = vmul.f32 1.442695, %v828_v20 }
 0x4a4   : > { %3106 = vpow2.f32 %v829_v21 }
 0x4a6   : > { %v3105_v22 = vpop.eup %3104 }
 0x4a7   : > { %v979_v24 = vpop.xlane.xlu1 %978  ;;  %v683_v25 = vsel %vm627_vm3, %v3105_v22, 0.0 }
 0x4a8   : > { %v980_v26 = vsub.f32 %v976_v6, %v979_v24  ;;  %684 = vadd.xlane.f32.xlu0 %v683_v25  ;;  %v3074_v6 = vld [vmem:[%s3799_s4] sm:$0xff]  }
 0x4a9   : > { %2875 = vmatpush3.bf16.msra.mxu0 %v3074_v6 }
 0x4aa   : > { %v981_v27 = vmul.f32 1.442695, %v980_v26  ;;  %2876 = vmatprep.subr.bf16.mxu0 %v3212_v8 }
 0x4ac   : > { %3108 = vpow2.f32 %v981_v27 }
 0x4ad   : > { %2877 = vmatpush3.bf16.msra.mxu0 %v3075_v7 }
 0x4ae   : > { %v3107_v28 = vpop.eup %3106  ;;  %2890 = vmatprep.subr.bf16.mxu0 %v3212_v8 }
 0x4af   : > { %v831_v29 = vsel %vm627_vm3, %v3107_v28, 0.0  ;;  %v1131_v32 = vpop.xlane.xlu1 %1130 }
 0x4b0   : > { %832 = vadd.xlane.f32.xlu1 %v831_v29  ;;  %v1132_v33 = vsub.f32 %v1128_v14, %v1131_v32 }
 0x4b2   : > { %v1133_v34 = vmul.f32 1.442695, %v1132_v33 }
 0x4b4   : > { %3110 = vpow2.f32 %v1133_v34 }
 0x4b6   : > { %v3109_v30 = vpop.eup %3108 }
 0x4b7   : > { %v983_v31 = vsel %vm627_vm3, %v3109_v30, 0.0 }
 0x4b8   : > { %984 = vadd.xlane.f32.xlu0 %v983_v31 }
 0x4be   : > { %v3111_v35 = vpop.eup %3110 }
 0x4bf   : > { %v1135_v36 = vsel %vm627_vm3, %v3111_v35, 0.0 }
 0x4c1   : > { %837 = vrot.lane.b32.xlu1 %v3393_v23, %s3817_s16  ;;  %s3822_s16 = smov 24  }
 0x4ce   : > { %690 = vrot.lane.b32.xlu0 %v3393_v23, %s3819_s30  ;;  %s3836_s30 = smov 96  }
 0x4d2   : > { %1141 = vrot.lane.b32.xlu0 %v3393_v23, %s3816_s26  ;;  %s3824_s26 = smov 8  }
 0x4e5   : > { %1136 = vadd.xlane.f32.xlu1 %v1135_v36  ;;  %v3076_v36 = vld [vmem:[%s3803_s8] sm:$0xff]  }
 0x4f6   : > { %989 = vrot.lane.b32.xlu1 %v3393_v23, %s3818_s25  ;;  %s3841_s25 = smov 64  }
 0x535   : > { %v685_v37 = vpop.xlane.xlu0 %684 }
 0x536   : > { %3112 = vrcp.f32 %v685_v37  ;;  %v3078_v37 = vld [vmem:[%s3805_s10] sm:$0xff]  }
 0x53d   : > { %v833_v38 = vpop.xlane.xlu1 %832 }
 0x53e   : > { %3114 = vrcp.f32 %v833_v38 }
 0x540   : > { %v3113_v39 = vpop.eup %3112 }
 0x541   : > { %v687_v41 = vmul.f32 %v3113_v39, %v3105_v22  ;;  %v838_v44 = vpop.permute.xlu1 %837  ;;  %v2652_v22 = vld [vmem:[%s3800_s5] ss:$0 sm:$0xff] }
 0x542   : > { %v843_v47 = vsel %vm631_vm2, %v838_v44, 0  ;;  %v2657_v44 = vld [vmem:[%s3802_s7] ss:$0 sm:$0xff] }
 0x543   : > { %v688_v45 = vpack.c.bf16 %v687_v41, %v687_v41 }
 0x545   : > { %v985_v40 = vpop.xlane.xlu0 %984 }
 0x546   : > { %3116 = vrcp.f32 %v985_v40 }
 0x548   : > { %v3115_v46 = vpop.eup %3114 }
 0x549   : > { %v691_v42 = vpop.permute.xlu0 %690  ;;  %v835_v23 = vmul.f32 %v3115_v46, %v3107_v28 }
 0x54a   : > { %v696_v43 = vsel %vm631_vm2, %v691_v42, 0  ;;  %v2656_v42 = vld [vmem:[%s3801_s6] ss:$0 sm:$0xff] }
 0x54b   : > { %2833 = vmatpush3.bf16.msra.mxu1 %v696_v43  ;;  %v836_v48 = vpack.c.bf16 %v835_v23, %v835_v23  ;;  %v3079_v23 = vld [vmem:[%s3805_s10 + $0x8] sm:$0xff]  }
 0x54c   : > { %2844 = vmatprep.subr.bf16.mxu1 %v3212_v8 }
 0x54d   : > { %v1142_v55 = vpop.permute.xlu0 %1141 }
 0x54e   : > { %2835 = vmatmul.mubr.msk.bf16.vlgmr.msra.gmra.mrb[0].mxu1 %vm627_vm3, %v688_v45  ;;  %v1147_v57 = vsel %vm631_vm2, %v1142_v55, 0  ;;  %v2658_v55 = vld [vmem:[%s3804_s9] ss:$0 sm:$0xff] }
 0x54f   : > { %2845 = vmatpush3.bf16.msra.mxu1 %v843_v47  ;;  %2846 = vmatprep.mubr.msk.bf16.mxu1 %vm3213_vm1, %v3212_v8 }
 0x550   : > { %2856 = vmatprep.subr.bf16.mxu1 %v3212_v8  ;;  %v3117_v49 = vpop.eup %3116 }
 0x551   : > { %v987_v52 = vmul.f32 %v3117_v49, %v3109_v30  ;;  %v3081_v49 = vld [vmem:[%s3805_s10 + $0x18] sm:$0xff]  }
 0x553   : > { %v988_v56 = vpack.c.bf16 %v987_v52, %v987_v52  ;;  %v3083_v52 = vld [vmem:[%s3805_s10 + $0x28] sm:$0xff]  }
 0x556   : > { %2847 = vmatmul.mubr.msk.bf16.vlgmr.msra.gmra.mrb[4].mxu1 %vm627_vm3, %v836_v48  ;;  %v3080_v48 = vld [vmem:[%s3805_s10 + $0x10] sm:$0xff]  }
 0x557   : > { %2858 = vmatprep.mubr.msk.bf16.mxu1 %vm3213_vm1, %v3212_v8 }
 0x572   : > { %v1137_v51 = vpop.xlane.xlu1 %1136 }
 0x573   : > { %3118 = vrcp.f32 %v1137_v51  ;;  %v3082_v51 = vld [vmem:[%s3805_s10 + $0x20] sm:$0xff]  }
 0x576   : > { %v990_v53 = vpop.permute.xlu1 %989 }
 0x577   : > { %v995_v54 = vsel %vm631_vm2, %v990_v53, 0  ;;  %v3084_v53 = vld [vmem:[%s3805_s10 + $0x30] sm:$0xff]  }
 0x578   : > { %2857 = vmatpush3.bf16.msra.mxu1 %v995_v54  ;;  %v3085_v54 = vld [vmem:[%s3805_s10 + $0x38] sm:$0xff]  }
 0x579   : > { %2868 = vmatprep.subr.bf16.mxu1 %v3212_v8 }
 0x57b   : > { %2859 = vmatmul.mubr.msk.bf16.vlgmr.msra.gmra.mrb[8].mxu1 %vm627_vm3, %v988_v56 }
 0x57c   : > { %2869 = vmatpush3.bf16.msra.mxu1 %v1147_v57  ;;  %2870 = vmatprep.mubr.msk.bf16.mxu1 %vm3213_vm1, %v3212_v8 }
 0x57d   : > { %v3119_v58 = vpop.eup %3118  ;;  %2882 = vmatprep.subr.bf16.mxu1 %v3212_v8 }
 0x57e   : > { %v1139_v59 = vmul.f32 %v3119_v58, %v3111_v35 }
 0x580   : > { %v1140_v60 = vpack.c.bf16 %v1139_v59, %v1139_v59 }
 0x583   : > { %2871 = vmatmul.mubr.msk.bf16.vlgmr.msra.gmra.mrb[12].mxu1 %vm627_vm3, %v1140_v60 }
 0x584   : > { %2886 = vmatprep.mubr.msk.bf16.mxu1 %vm3213_vm1, %v3212_v8  ;;  %2883 = vmatpush3.bf16.msra.mxu1 %v3076_v36 }
 0x585   : > { %2884 = vmatprep.subr.bf16.mxu1 %v3212_v8 }
 0x621   : > { %v732_v61 = vpop.f32.mrb[0].mxu1 }
 0x622   : > { %738 = vst.msk [vmem:[#allocation2] sm:$0xff] %vm627_vm3, %v732_v61  ;;  %v2836_v62 = vpop.f32.mrb[1].mxu1 }
 0x623   : > { %v735_v63 = vpop.f32.mrb[2].mxu1 }
 0x624   : > { %v2837_v1 = vpop.f32.mrb[3].mxu1 }
 0x629   : > { %v879_v2 = vpop.f32.mrb[4].mxu1 }
 0x62a   : > { %886 = vrot.lane.b32.xlu1 %v879_v2, %s3824_s26  ;;  %v2848_v3 = vpop.f32.mrb[5].mxu1  ;;  %s3843_s26 = smov 112  }
 0x62b   : > { %v882_v4 = vpop.f32.mrb[6].mxu1 }
 0x62c   : > { %v2849_v5 = vpop.f32.mrb[7].mxu1 }
 0x64e   : > { %v1031_v9 = vpop.f32.mrb[8].mxu1 }
 0x64f   : > { %1038 = vrot.lane.b32.xlu0 %v1031_v9, %s3823_s17  ;;  %v2860_v10 = vpop.f32.mrb[9].mxu1  ;;  %v2662_v9 = vld [vmem:[%s3806_s11] ss:$0 sm:$0xff]  ;;  %s3842_s17 = smov 120  }
 0x650   : > { %v1034_v11 = vpop.f32.mrb[10].mxu1 }
 0x651   : > { %v2861_v12 = vpop.f32.mrb[11].mxu1 }
 0x656   : > { %v1183_v13 = vpop.f32.mrb[12].mxu1 }
 0x657   : > { %1190 = vrot.lane.b32.xlu1 %v1183_v13, %s3822_s16  ;;  %v2872_v14 = vpop.f32.mrb[13].mxu1  ;;  %s3837_s16 = smov 88  }
 0x658   : > { %v1186_v15 = vpop.f32.mrb[14].mxu1 }
 0x659   : > { %v2873_v16 = vpop.f32.mrb[15].mxu1 }
 0x69c   : > { %v887_v17 = vpop.permute.xlu1 %886 }
 0x69d   : > { %890 = vst.msk [vmem:[#allocation2] sm:$0xff] %vm889_vm5, %v887_v17 }
 0x6c1   : > { %v1039_v18 = vpop.permute.xlu0 %1038 }
 0x6c2   : > { %1042 = vst.msk [vmem:[#allocation2] sm:$0xff] %vm1041_vm6, %v1039_v18 }
 0x6c9   : > { %v1191_v19 = vpop.permute.xlu1 %1190 }
 0x6ca   : > { %1194 = vst.msk [vmem:[#allocation2] sm:$0xff] %vm1193_vm7, %v1191_v19 }
 0x6d1   : > { %v1195_v20 = vld [vmem:[#allocation2] sm:$0xff] }
 0x6d2   : > { %v1196_v21 = vpack.c.bf16 %v1195_v20, %v1195_v20 }
 0x6d4   : > { %2879 = vmatmul.mubr.msk.bf16.vlgmr.msra.gmra.mrb[20].mxu0 %vm500_vm0, %v1196_v21 }
 0x6d5   : > { %2906 = vmatprep.mubr.msk.bf16.mxu0 %vm3213_vm1, %v3212_v8  ;;  %2891 = vmatpush3.bf16.msra.mxu0 %v3078_v37 }
 0x6d6   : > { %2892 = vmatprep.subr.bf16.mxu0 %v3212_v8 }
 0x6d9   : > { %2893 = vmatpush3.bf16.msra.mxu0 %v3079_v23 }
 0x6da   : > { %2894 = vmatprep.subr.bf16.mxu0 %v3212_v8 }
 0x6dd   : > { %2895 = vmatpush3.bf16.msra.mxu0 %v3080_v48 }
 0x6de   : > { %2896 = vmatprep.subr.bf16.mxu0 %v3212_v8 }
 0x6e1   : > { %2897 = vmatpush3.bf16.msra.mxu0 %v3081_v49 }
 0x6e2   : > { %2898 = vmatprep.subr.bf16.mxu0 %v3212_v8 }
 0x6e5   : > { %2899 = vmatpush3.bf16.msra.mxu0 %v3082_v51 }
 0x6e6   : > { %2900 = vmatprep.subr.bf16.mxu0 %v3212_v8 }
 0x6e9   : > { %2901 = vmatpush3.bf16.msra.mxu0 %v3083_v52 }
 0x6ea   : > { %2902 = vmatprep.subr.bf16.mxu0 %v3212_v8 }
 0x6ed   : > { %2903 = vmatpush3.bf16.msra.mxu0 %v3084_v53 }
 0x6ee   : > { %2904 = vmatprep.subr.bf16.mxu0 %v3212_v8 }
 0x6f1   : > { %2905 = vmatpush3.bf16.msra.mxu0 %v3085_v54 }
 0x6f2   : > { %2936 = vmatprep.subr.bf16.mxu0 %v3212_v8 }
 0x7a7   : > { %v1257_v24 = vpop.f32.mrb[20].mxu0 }
 0x7a8   : > { %v1258_v25 = vadd.f32 %v2652_v22, %v1257_v24  ;;  %v2880_v26 = vpop.f32.mrb[21].mxu0  ;;  %v3086_v22 = vld [vmem:[%s3833_s3 + $0x10] sm:$0xff]   ;;  %v3087_v24 = vld [vmem:[%s3833_s3 + $0x18] sm:$0xff]  }
 0x7a9   : > { %v1260_v27 = vpop.f32.mrb[22].mxu0 }
 0x7aa   : > { %v3489_v28 = vadd.f32 %v1258_v25, %v3362_v0  ;;  %v2881_v29 = vpop.f32.mrb[23].mxu0  ;;  %v3077_v0 = vld [vmem:[%s3803_s8 + $0x8] sm:$0xff]  }
 0x7ab   : > { %2885 = vmatpush3.bf16.msra.mxu1 %v3077_v0  ;;  %v2673_v29 = vld [vmem:[%s3834_s1 + $0x1] ss:$0 sm:$0xff]  ;;  %s2744_s1 = sshll.u32 %s3330_s22, 7  ;;  %s3228_s22 = smov [#allocation3]  }
 0x7ac   : > { %v1266_v30 = vsel %vm500_vm0, %v3489_v28, 0.0  ;;  %2910 = vmatprep.subr.bf16.mxu1 %v3212_v8 }
 0x7ad   : > { %1267 = vadd.xlane.f32.xlu0 %v1266_v30 }
 0x83a   : > { %v1268_v31 = vpop.xlane.xlu0 %1267 }
 0x83b   : > { %v1269_v32 = vmul.f32 0.03125, %v1268_v31  ;;  %v2674_v31 = vld [vmem:[%s3835_s2 + $0x1] ss:$0 sm:$0xff] }
 0x83d   : > { %v1270_v33 = vsub.f32 %v3489_v28, %v1269_v32 }
 0x83f   : > { %v1271_v34 = vmul.f32 %v1270_v33, %v1270_v33 }
 0x841   : > { %v1272_v35 = vsel %vm500_vm0, %v1271_v34, 0.0 }
 0x842   : > { %1273 = vadd.xlane.f32.xlu1 %v1272_v35 }
 0x8cf   : > { %v1274_v38 = vpop.xlane.xlu1 %1273 }
 0x8d0   : > { %v1275_v39 = vmul.f32 0.03125, %v1274_v38 }
 0x8d2   : > { %v1276_v40 = vadd.f32 1e-05, %v1275_v39 }
 0x8d4   : > { %3120 = vrsqrt.f32 %v1276_v40 }
 0x8de   : > { %v3121_v41 = vpop.eup %3120 }
 0x8df   : > { %v1278_v43 = vmul.f32 %v3121_v41, %v1270_v33 }
 0x8e1   : > { %v1285_v45 = vmul.f32 %v2656_v42, %v1278_v43 }
 0x8e3   : > { %v1292_v46 = vadd.f32 %v2657_v44, %v1285_v45 }
 0x8e5   : > { %v1293_v47 = vpack.c.bf16 %v1292_v46, %v1292_v46 }
 0x8e7   : > { %2887 = vmatmul.mubr.msk.bf16.vlgmr.msra.gmra.mrb[16].mxu1 %vm500_vm0, %v1293_v47 }
 0x8e8   : > { %2914 = vmatprep.mubr.msk.bf16.mxu1 %vm3213_vm1, %v3212_v8  ;;  %2911 = vmatpush3.bf16.msra.mxu1 %v3086_v22 }
 0x8e9   : > { %2912 = vmatprep.subr.bf16.mxu1 %v3212_v8 }
 0x8ec   : > { %2913 = vmatpush3.bf16.msra.mxu1 %v3087_v24 }
 0x8ed   : > { %2918 = vmatprep.subr.bf16.mxu1 %v3212_v8 }
 0x9ba   : > { %v1354_v56 = vpop.f32.mrb[16].mxu1 }
 0x9bb   : > { %v1355_v57 = vadd.f32 %v2658_v55, %v1354_v56  ;;  %v2888_v58 = vpop.f32.mrb[17].mxu1 }
 0x9bc   : > { %v1357_v59 = vpop.f32.mrb[18].mxu1 }
 0x9bd   : > { %v1361_v60 = vmul.f32 0.044715, %v1355_v57  ;;  %v2889_v61 = vpop.f32.mrb[19].mxu1  ;;  %v1360_v4 = vmul.f32 0.5, %v1355_v57 }
 0x9bf   : > { %v1362_v62 = vmul.f32 %v1361_v60, %v1355_v57 }
 0x9c1   : > { %v1363_v63 = vmul.f32 %v1362_v62, %v1355_v57 }
 0x9c3   : > { %v1364_v1 = vadd.f32 %v1363_v63, %v1355_v57 }
 0x9c5   : > { %v1365_v2 = vmul.f32 0.7978845, %v1364_v1 }
 0x9c7   : > { %3122 = vtanh.f32 %v1365_v2 }
 0x9d1   : > { %v3123_v3 = vpop.eup %3122 }
 0x9d2   : > { %v1367_v5 = vadd.f32 1.0, %v3123_v3 }
 0x9d4   : > { %v1368_v6 = vmul.f32 %v1367_v5, %v1360_v4 }
 0x9d6   : > { %v1369_v7 = vpack.c.bf16 %v1368_v6, %v1368_v6 }
 0x9d8   : > { %2907 = vmatmul.mubr.bf16.vlgmr.msra.gmra.mrb[24].mxu0 %v1369_v7 }
 0x9d9   : > { %2938 = vmatprep.mubr.msk.bf16.mxu0 %vm3213_vm1, %v3212_v8 }
 0xaab   : > { %v1475_v10 = vpop.f32.mrb[24].mxu0 }
 0xaac   : > { %v1476_v11 = vadd.f32 %v2662_v9, %v1475_v10  ;;  %v2908_v12 = vpop.f32.mrb[25].mxu0 }
 0xaad   : > { %v1478_v13 = vpop.f32.mrb[26].mxu0 }
 0xaae   : > { %v3553_v14 = vadd.f32 %v1476_v11, %v3489_v28  ;;  %v2909_v15 = vpop.f32.mrb[27].mxu0 }
 0xab0   : > { %v1486_v16 = vsel %vm500_vm0, %v3553_v14, 0.0 }
 0xab1   : > { %1487 = vadd.xlane.f32.xlu0 %v1486_v16 }
 0xb3e   : > { %v1488_v17 = vpop.xlane.xlu0 %1487 }
 0xb3f   : > { %v1489_v18 = vmul.f32 0.03125, %v1488_v17 }
 0xb41   : > { %v1490_v19 = vsub.f32 %v3553_v14, %v1489_v18 }
 0xb43   : > { %v1491_v20 = vmul.f32 %v1490_v19, %v1490_v19 }
 0xb45   : > { %v1492_v21 = vsel %vm500_vm0, %v1491_v20, 0.0 }
 0xb46   : > { %1493 = vadd.xlane.f32.xlu0 %v1492_v21 }
 0xbd3   : > { %v1494_v25 = vpop.xlane.xlu0 %1493 }
 0xbd4   : > { %v1495_v26 = vmul.f32 0.03125, %v1494_v25 }
 0xbd6   : > { %v1496_v27 = vadd.f32 1e-05, %v1495_v26 }
 0xbd8   : > { %3124 = vrsqrt.f32 %v1496_v27 }
 0xbe2   : > { %v3125_v28 = vpop.eup %3124 }
 0xbe3   : > { %v1498_v30 = vmul.f32 %v3125_v28, %v1490_v19 }
 0xbe5   : > { %v1505_v32 = vmul.f32 %v2673_v29, %v1498_v30 }
 0xbe7   : > { %v1512_v33 = vadd.f32 %v2674_v31, %v1505_v32 }
 0xbe9   : > { %v1513_v34 = vpack.c.bf16 %v1512_v33, %v1512_v33 }
 0xbeb   : > { %2915 = vmatmul.mubr.msk.bf16.vlgmr.msra.gmra.mrb[20].mxu1 %vm500_vm0, %v1513_v34 }
 0xbec   : > { %2920 = vmatprep.mubr.msk.bf16.mxu1 %vm3213_vm1, %v3212_v8 }
 0xcbe   : > { %v1568_v35 = vpop.f32.mrb[20].mxu1 }
 0xcbf   : > { %1576 = vrot.lane.b32.xlu1 %v1568_v35, %s3836_s30  ;;  %v2916_v36 = vpop.f32.mrb[21].mxu1  ;;  %v3578_v39 = vpack.c.bf16 %v1568_v35, %v1568_v35  ;;  %s3844_s30 = smov 48  }
 0xcc0   : > { %v1571_v0 = vpop.f32.mrb[22].mxu1 }
 0xcc1   : > { %v2917_v37 = vpop.f32.mrb[23].mxu1 }
 0xd31   : > { %v1577_v38 = vpop.permute.xlu1 %1576 }
 0xd32   : > { %1579 = vxpose.xlu0.b32.start.end [1/1] (short) (narrow) %v1577_v38, 8 }
 0xd5b   : > { %1722 = vrot.lane.b32.xlu0 %v1568_v35, %s3837_s16  ;;  %s3845_s16 = smov 56  }
 0xd5f   : > { %2060 = vrot.lane.b32.xlu0 %v3578_v39, %s3838_s23  ;;  %s3846_s23 = smov 40  }
 0xdb2   : > { %v1595_v40 = vpop.trf.xlu0 }
 0xdb3   : > { %v1611_v41 = vpack.c.bf16 %v1595_v40, %v1595_v40 }
 0xdb5   : > { %v1616_v42 = vsel %vm631_vm2, %v1611_v41, 0 }
 0xdb6   : > { %2919 = vmatpush3.bf16.msra.mxu1 %v1616_v42 }
 0xdb7   : > { %2924 = vmatprep.subr.bf16.mxu1 %v3212_v8 }
 0xdb9   : > { %2921 = vmatmul.mubr.msk.bf16.vlgmr.msra.gmra.mrb[24].mxu1 %vm627_vm3, %v3578_v39 }
 0xdba   : > { %2926 = vmatprep.mubr.msk.bf16.mxu1 %vm3213_vm1, %v3212_v8 }
 0xdcd   : > { %v1723_v59 = vpop.permute.xlu0 %1722 }
 0xdd1   : > { %v2061_v2 = vpop.permute.xlu0 %2060 }
 0xe8c   : > { %v1652_v43 = vpop.f32.mrb[24].mxu1 }
 0xe8d   : > { %v1658_v44 = vmul.f32 0.35355338, %v1652_v43  ;;  %v2922_v45 = vpop.f32.mrb[25].mxu1 }
 0xe8e   : > { %v1655_v46 = vpop.f32.mrb[26].mxu1 }
 0xe8f   : > { %v2923_v47 = vpop.f32.mrb[27].mxu1  ;;  %v1659_v23 = vadd.f32 %v1658_v44, %v3425_v50 }
 0xe91   : > { %v1660_v48 = vsel %vm627_vm3, %v1659_v23, -inf }
 0xe92   : > { %1661 = vmax.xlane.f32.xlu1 %v1660_v48 }
 0xea3   : > { %1873 = vrot.lane.b32.xlu1 %v1568_v35, %s3839_s0  ;;  %s3847_s0 = smov 8  }
 0xea7   : > { %2024 = vrot.lane.b32.xlu1 %v1568_v35, %s3840_s27  ;;  %s3848_s27 = smov 16  }
 0xeab   : > { %1673 = vrot.lane.b32.xlu1 %v3578_v39, %s3841_s25 }
 0xeaf   : > { %1758 = vrot.lane.b32.xlu1 %v3578_v39, %s3842_s17  ;;  %s3755_s17 = scalar_lea.hbm %s3810_s15, %s2744_s1 }
 0xf1f   : > { %v1662_v49 = vpop.xlane.xlu1 %1661 }
 0xf20   : > { %v1663_v51 = vsub.f32 %v1659_v23, %v1662_v49 }
 0xf22   : > { %v1664_v52 = vmul.f32 1.442695, %v1663_v51 }
 0xf23   : > { %v1874_v53 = vpop.permute.xlu1 %1873 }
 0xf24   : > { %3126 = vpow2.f32 %v1664_v52  ;;  %1876 = vxpose.xlu0.b32.start.end [1/1] (short) (narrow) %v1874_v53, 8 }
 0xf27   : > { %v2025_v54 = vpop.permute.xlu1 %2024 }
 0xf28   : > { %2027 = vxpose.xlu0.b32.start.end [1/1] (short) (narrow) %v2025_v54, 8 }
 0xf2b   : > { %v1674_v55 = vpop.permute.xlu1 %1673 }
 0xf2c   : > { %v1679_v56 = vsel %vm631_vm2, %v1674_v55, 0 }
 0xf2d   : > { %2925 = vmatpush3.bf16.msra.mxu1 %v1679_v56 }
 0xf2e   : > { %v3127_v57 = vpop.eup %3126  ;;  %2930 = vmatprep.subr.bf16.mxu1 %v3212_v8 }
 0xf2f   : > { %v1666_v58 = vsel %vm627_vm3, %v3127_v57, 0.0  ;;  %v1759_v60 = vpop.permute.xlu1 %1758 }
 0xf30   : > { %1667 = vadd.xlane.f32.xlu1 %v1666_v58 }
 0xf41   : > { %1909 = vrot.lane.b32.xlu1 %v3578_v39, %s3843_s26 }
 0xf6a   : > { %1725 = vxpose.xlu1.b32.start.end [1/1] (short) (narrow) %v1723_v59, 8 }
 0xfa4   : > { %v1892_v4 = vpop.trf.xlu0 }
 0xfa5   : > { %v1908_v7 = vpack.c.bf16 %v1892_v4, %v1892_v4 }
 0xfa7   : > { %v1915_v10 = vsel %vm631_vm2, %v1908_v7, 0 }
 0xfa8   : > { %v2043_v11 = vpop.trf.xlu0 }
 0xfa9   : > { %v2059_v12 = vpack.c.bf16 %v2043_v11, %v2043_v11 }
 0xfab   : > { %v2066_v13 = vsel %vm631_vm2, %v2059_v12, 0 }
 0xfbd   : > { %v1668_v61 = vpop.xlane.xlu1 %1667 }
 0xfbe   : > { %3128 = vrcp.f32 %v1668_v61 }
 0xfc1   : > { %v1910_v3 = vpop.permute.xlu1 %1909 }
 0xfc8   : > { %v3129_v62 = vpop.eup %3128 }
 0xfc9   : > { %v1670_v63 = vmul.f32 %v3129_v62, %v3127_v57 }
 0xfcb   : > { %v1671_v1 = vpack.c.bf16 %v1670_v63, %v1670_v63 }
 0xfcd   : > { %2927 = vmatmul.mubr.msk.bf16.vlgmr.msra.gmra.mrb[28].mxu1 %vm627_vm3, %v1671_v1 }
 0xfce   : > { %2932 = vmatprep.mubr.msk.bf16.mxu1 %vm3213_vm1, %v3212_v8 }
 0xfea   : > { %v1741_v5 = vpop.trf.xlu1 }
 0xfeb   : > { %v1757_v6 = vpack.c.bf16 %v1741_v5, %v1741_v5 }
 0xfed   : > { %v1764_v9 = vsel %vm631_vm2, %v1757_v6, 0 }
 0xfee   : > { %2931 = vmatpush3.bf16.msra.mxu1 %v1764_v9 }
 0xfef   : > { %2942 = vmatprep.subr.bf16.mxu1 %v3212_v8 }
 0xff1   : > { %2933 = vmatmul.mubr.msk.bf16.vlgmr.msra.gmra.mrb[32].mxu1 %vm627_vm3, %v1759_v60 }
 0xff2   : > { %2943 = vmatpush3.bf16.msra.mxu1 %v1915_v10  ;;  %2944 = vmatprep.mubr.msk.bf16.mxu1 %vm3213_vm1, %v3212_v8 }
 0xff3   : > { %2954 = vmatprep.subr.bf16.mxu1 %v3212_v8 }
 0xff9   : > { %2945 = vmatmul.mubr.msk.bf16.vlgmr.msra.gmra.mrb[36].mxu1 %vm627_vm3, %v1910_v3 }
 0xffa   : > { %2955 = vmatpush3.bf16.msra.mxu1 %v2066_v13  ;;  %2956 = vmatprep.mubr.msk.bf16.mxu1 %vm3213_vm1, %v3212_v8 }
 0xffb   : > { %2966 = vmatprep.subr.bf16.mxu1 %v3212_v8 }
0x1001   : > { %2957 = vmatmul.mubr.msk.bf16.vlgmr.msra.gmra.mrb[40].mxu1 %vm627_vm3, %v2061_v2 }
0x1002   : > { %2970 = vmatprep.mubr.msk.bf16.mxu1 %vm3213_vm1, %v3212_v8 }
0x10a0   : > { %v1715_v15 = vpop.f32.mrb[28].mxu1 }
0x10a1   : > { %1721 = vst.msk [vmem:[#allocation2] sm:$0xff] %vm627_vm3, %v1715_v15  ;;  %v2928_v16 = vpop.f32.mrb[29].mxu1 }
0x10a2   : > { %v1718_v17 = vpop.f32.mrb[30].mxu1 }
0x10a3   : > { %v2929_v18 = vpop.f32.mrb[31].mxu1 }
0x10c4   : > { %v1800_v19 = vpop.f32.mrb[32].mxu1 }
0x10c5   : > { %v1806_v20 = vmul.f32 0.35355338, %v1800_v19  ;;  %v2934_v21 = vpop.f32.mrb[33].mxu1  ;;  %v3088_v19 = vld [vmem:[%s3799_s4 + $0x10] sm:$0xff]  }
0x10c6   : > { %v1803_v22 = vpop.f32.mrb[34].mxu1  ;;  %2967 = vmatpush3.bf16.msra.mxu1 %v3088_v19 }
0x10c7   : > { %v2935_v24 = vpop.f32.mrb[35].mxu1  ;;  %v1807_v25 = vadd.f32 %v1806_v20, %v3425_v50  ;;  %v3089_v20 = vld [vmem:[%s3799_s4 + $0x18] sm:$0xff]   ;;  %2968 = vmatprep.subr.bf16.mxu1 %v3212_v8 }
0x10c9   : > { %v1808_v26 = vsel %vm627_vm3, %v1807_v25, -inf }
0x10ca   : > { %1809 = vmax.xlane.f32.xlu0 %v1808_v26  ;;  %2969 = vmatpush3.bf16.msra.mxu1 %v3089_v20 }
0x10cb   : > { %2982 = vmatprep.subr.bf16.mxu1 %v3212_v8 }
0x10cc   : > { %v1951_v27 = vpop.f32.mrb[36].mxu1 }
0x10cd   : > { %v1957_v28 = vmul.f32 0.35355338, %v1951_v27  ;;  %v2946_v29 = vpop.f32.mrb[37].mxu1 }
0x10ce   : > { %v1954_v30 = vpop.f32.mrb[38].mxu1 }
0x10cf   : > { %v2947_v31 = vpop.f32.mrb[39].mxu1  ;;  %v1958_v32 = vadd.f32 %v1957_v28, %v3425_v50 }
0x10d0   : > { %v2695_v31 = vld [vmem:[%s3800_s5 + $0x1] ss:$0 sm:$0xff] }
0x10d1   : > { %v1959_v33 = vsel %vm627_vm3, %v1958_v32, -inf }
0x10d2   : > { %1960 = vmax.xlane.f32.xlu1 %v1959_v33 }
0x10d4   : > { %v2102_v34 = vpop.f32.mrb[40].mxu1 }
0x10d5   : > { %v2108_v35 = vmul.f32 0.35355338, %v2102_v34  ;;  %v2958_v36 = vpop.f32.mrb[41].mxu1 }
0x10d6   : > { %v2105_v0 = vpop.f32.mrb[42].mxu1 }
0x10d7   : > { %v2959_v37 = vpop.f32.mrb[43].mxu1  ;;  %v2109_v38 = vadd.f32 %v2108_v35, %v3425_v50 }
0x10d9   : > { %v2110_v40 = vsel %vm627_vm3, %v2109_v38, -inf }
0x10da   : > { %2111 = vmax.xlane.f32.xlu0 %v2110_v40 }
0x1157   : > { %v1810_v41 = vpop.xlane.xlu0 %1809 }
0x1158   : > { %v1811_v42 = vsub.f32 %v1807_v25, %v1810_v41 }
0x115a   : > { %v1812_v43 = vmul.f32 1.442695, %v1811_v42 }
0x115c   : > { %3130 = vpow2.f32 %v1812_v43 }
0x115f   : > { %v1961_v44 = vpop.xlane.xlu1 %1960 }
0x1160   : > { %v1962_v45 = vsub.f32 %v1958_v32, %v1961_v44  ;;  %v3090_v44 = vld [vmem:[%s3803_s8 + $0x10] sm:$0xff]  }
0x1162   : > { %v1963_v46 = vmul.f32 1.442695, %v1962_v45  ;;  %v3092_v45 = vld [vmem:[%s3805_s10 + $0x40] sm:$0xff]  }
0x1164   : > { %3132 = vpow2.f32 %v1963_v46 }
0x1166   : > { %v3131_v47 = vpop.eup %3130 }
0x1167   : > { %v1814_v23 = vsel %vm627_vm3, %v3131_v47, 0.0  ;;  %v2112_v50 = vpop.xlane.xlu0 %2111 }
0x1168   : > { %1815 = vadd.xlane.f32.xlu1 %v1814_v23  ;;  %v2113_v51 = vsub.f32 %v2109_v38, %v2112_v50 }
0x116a   : > { %v2114_v52 = vmul.f32 1.442695, %v2113_v51  ;;  %v2702_v51 = vld [vmem:[%s3802_s7 + $0x1] ss:$0 sm:$0xff] }
0x116c   : > { %3134 = vpow2.f32 %v2114_v52 }
0x116e   : > { %v3133_v48 = vpop.eup %3132 }
0x116f   : > { %v1965_v49 = vsel %vm627_vm3, %v3133_v48, 0.0 }
0x1170   : > { %1966 = vadd.xlane.f32.xlu0 %v1965_v49  ;;  %v2701_v49 = vld [vmem:[%s3801_s6 + $0x1] ss:$0 sm:$0xff] }
0x1176   : > { %v3135_v53 = vpop.eup %3134 }
0x1177   : > { %v2116_v54 = vsel %vm627_vm3, %v3135_v53, 0.0 }
0x1179   : > { %1971 = vrot.lane.b32.xlu1 %v3578_v39, %s3844_s30  ;;  %s483_s30 = sand.u32 1, %s3202_s19  }
0x117a   : > { %s2561_s26 = scalar_lea.sflag [#allocation4], %s483_s30 }
0x1186   : > { %1820 = vrot.lane.b32.xlu0 %v3578_v39, %s3845_s16  ;;  %s3849_s16 = smov 24  }
0x119d   : > { %2117 = vadd.xlane.f32.xlu1 %v2116_v54 }
0x11ae   : > { %2122 = vrot.lane.b32.xlu1 %v3578_v39, %s3846_s23 }
0x11f5   : > { %v1816_v55 = vpop.xlane.xlu1 %1815 }
0x11f6   : > { %3136 = vrcp.f32 %v1816_v55  ;;  %v3093_v55 = vld [vmem:[%s3805_s10 + $0x48] sm:$0xff]  }
0x11f9   : > { %v1972_v61 = vpop.permute.xlu1 %1971 }
0x11fa   : > { %v1977_v63 = vsel %vm631_vm2, %v1972_v61, 0  ;;  %v3099_v61 = vld [vmem:[%s3805_s10 + $0x78] sm:$0xff]  }
0x11fd   : > { %v1967_v56 = vpop.xlane.xlu0 %1966 }
0x11fe   : > { %3138 = vrcp.f32 %v1967_v56  ;;  %v3094_v56 = vld [vmem:[%s3805_s10 + $0x50] sm:$0xff]  }
0x1200   : > { %v3137_v57 = vpop.eup %3136 }
0x1201   : > { %v1818_v58 = vmul.f32 %v3137_v57, %v3131_v47  ;;  %v1821_v59 = vpop.permute.xlu0 %1820  ;;  %v3095_v57 = vld [vmem:[%s3805_s10 + $0x58] sm:$0xff]  }
0x1202   : > { %v1826_v60 = vsel %vm631_vm2, %v1821_v59, 0  ;;  %v3097_v59 = vld [vmem:[%s3805_s10 + $0x68] sm:$0xff]  }
0x1203   : > { %2937 = vmatpush3.bf16.msra.mxu0 %v1826_v60  ;;  %v1819_v62 = vpack.c.bf16 %v1818_v58, %v1818_v58  ;;  %v3096_v58 = vld [vmem:[%s3805_s10 + $0x60] sm:$0xff]   ;;  %v3098_v60 = vld [vmem:[%s3805_s10 + $0x70] sm:$0xff]  }
0x1204   : > { %2948 = vmatprep.subr.bf16.mxu0 %v3212_v8 }
0x1206   : > { %2939 = vmatmul.mubr.msk.bf16.vlgmr.msra.gmra.mrb[28].mxu0 %vm627_vm3, %v1819_v62  ;;  %v2708_v62 = vld [vmem:[%s3804_s9 + $0x1] ss:$0 sm:$0xff] }
0x1207   : > { %2949 = vmatpush3.bf16.msra.mxu0 %v1977_v63  ;;  %2950 = vmatprep.mubr.msk.bf16.mxu0 %vm3213_vm1, %v3212_v8 }
0x1208   : > { %v3139_v39 = vpop.eup %3138  ;;  %2960 = vmatprep.subr.bf16.mxu0 %v3212_v8 }
0x1209   : > { %v1969_v1 = vmul.f32 %v3139_v39, %v3133_v48 }
0x120b   : > { %v1970_v2 = vpack.c.bf16 %v1969_v1, %v1969_v1 }
0x120e   : > { %2951 = vmatmul.mubr.msk.bf16.vlgmr.msra.gmra.mrb[32].mxu0 %vm627_vm3, %v1970_v2 }
0x120f   : > { %2962 = vmatprep.mubr.msk.bf16.mxu0 %vm3213_vm1, %v3212_v8 }
0x122a   : > { %v2118_v3 = vpop.xlane.xlu1 %2117 }
0x122b   : > { %3140 = vrcp.f32 %v2118_v3 }
0x122e   : > { %v2123_v4 = vpop.permute.xlu1 %2122 }
0x122f   : > { %v2128_v5 = vsel %vm631_vm2, %v2123_v4, 0 }
0x1230   : > { %2961 = vmatpush3.bf16.msra.mxu0 %v2128_v5 }
0x1231   : > { %2974 = vmatprep.subr.bf16.mxu0 %v3212_v8 }
0x1235   : > { %v3141_v6 = vpop.eup %3140 }
0x1236   : > { %v2120_v7 = vmul.f32 %v3141_v6, %v3135_v53 }
0x1238   : > { %v2121_v9 = vpack.c.bf16 %v2120_v7, %v2120_v7 }
0x123a   : > { %2963 = vmatmul.mubr.msk.bf16.vlgmr.msra.gmra.mrb[36].mxu0 %vm627_vm3, %v2121_v9 }
0x123b   : > { %2978 = vmatprep.mubr.msk.bf16.mxu0 %vm3213_vm1, %v3212_v8  ;;  %2975 = vmatpush3.bf16.msra.mxu0 %v3090_v44 }
0x123c   : > { %2976 = vmatprep.subr.bf16.mxu0 %v3212_v8 }
0x12d9   : > { %v1862_v10 = vpop.f32.mrb[28].mxu0 }
0x12da   : > { %1869 = vrot.lane.b32.xlu1 %v1862_v10, %s3847_s0  ;;  %v2940_v11 = vpop.f32.mrb[29].mxu0 }
0x12db   : > { %v1865_v12 = vpop.f32.mrb[30].mxu0 }
0x12dc   : > { %v2941_v13 = vpop.f32.mrb[31].mxu0 }
0x12e1   : > { %v2013_v15 = vpop.f32.mrb[32].mxu0 }
0x12e2   : > { %2020 = vrot.lane.b32.xlu0 %v2013_v15, %s3848_s27  ;;  %v2952_v16 = vpop.f32.mrb[33].mxu0 }
0x12e3   : > { %v2016_v17 = vpop.f32.mrb[34].mxu0  ;;  %v2729_v16 = vld [vmem:[%s3806_s11 + $0x1] ss:$0 sm:$0xff] }
0x12e4   : > { %v2953_v18 = vpop.f32.mrb[35].mxu0 }
0x130d   : > { %v2164_v21 = vpop.f32.mrb[36].mxu0 }
0x130e   : > { %2171 = vrot.lane.b32.xlu1 %v2164_v21, %s3849_s16  ;;  %v2964_v22 = vpop.f32.mrb[37].mxu0  ;;  %s2637_s16 = sshll.u32 %s483_s30, 3 }
0x130f   : > { %v2167_v24 = vpop.f32.mrb[38].mxu0  ;;  %s485_s23 = scalar_lea.vmem [#allocation3], %s2637_s16  ;;  %s3152_s16 = sshll.u32 %s3228_s22, 4  ;;  %s3153_s16 = int_to_ptr.vmem [resolvable:$false] %s3152_s16 }
0x1310   : > { %v2965_v25 = vpop.f32.mrb[39].mxu0  ;;  %s2574_s0 = sshll.u32 %s485_s23, 4  ;;  %s3154_s3 = scalar_lea.vmem %s3153_s16, 256  ;;  %s3750_s0 = int_to_ptr.vmem [resolvable:$true] %s2574_s0 }
0x1311   : > { %s3148_s2 = scalar_lea.vmem %s3750_s0, 128  ;;  %p3155_p0 = scmp.lt.s32.totalorder %s3750_s0, %s3153_s16 }
0x1312   : > { %p3149_p11 = scmp.ne.s32.totalorder %s3750_s0, %s3148_s2  ;;  %p3156_p1 = scmp.lt.s32.totalorder %s3154_s3, %s3148_s2 }
0x1314   : > { %p3150_p12 = pnand %p3149_p11, %p3347_p5  ;;  %p3157_p2 = por %p3156_p1, %p3155_p0 }
0x1316   : > { %p3151_p13 = pneg %p3150_p12 }
0x1318   : > { %p3158_p3 = pnand %p3157_p2, %p3151_p13 }
0x134c   : > { %v1870_v26 = vpop.permute.xlu1 %1869 }
0x134d   : > { %1872 = vst.msk [vmem:[#allocation2] sm:$0xff] %vm889_vm5, %v1870_v26 }
0x1354   : > { %v2021_v27 = vpop.permute.xlu0 %2020 }
0x1355   : > { %2023 = vst.msk [vmem:[#allocation2] sm:$0xff] %vm1041_vm6, %v2021_v27 }
0x1380   : > { %v2172_v28 = vpop.permute.xlu1 %2171 }
0x1381   : > { %2174 = vst.msk [vmem:[#allocation2] sm:$0xff] %vm1193_vm7, %v2172_v28 }
0x1388   : > { %v2175_v29 = vld [vmem:[#allocation2] sm:$0xff] }
0x1389   : > { %v2176_v30 = vpack.c.bf16 %v2175_v29, %v2175_v29 }
0x138b   : > { %2971 = vmatmul.mubr.msk.bf16.vlgmr.msra.gmra.mrb[44].mxu1 %vm500_vm0, %v2176_v30  ;;  %v3100_v30 = vld [vmem:[%s3809_s14] sm:$0xff]  }
0x138c   : > { %2998 = vmatprep.mubr.msk.bf16.mxu1 %vm3213_vm1, %v3212_v8  ;;  %2983 = vmatpush3.bf16.msra.mxu1 %v3092_v45 }
0x138d   : > { %2984 = vmatprep.subr.bf16.mxu1 %v3212_v8 }
0x1390   : > { %2985 = vmatpush3.bf16.msra.mxu1 %v3093_v55 }
0x1391   : > { %2986 = vmatprep.subr.bf16.mxu1 %v3212_v8 }
0x1394   : > { %2987 = vmatpush3.bf16.msra.mxu1 %v3094_v56 }
0x1395   : > { %2988 = vmatprep.subr.bf16.mxu1 %v3212_v8 }
0x1398   : > { %2989 = vmatpush3.bf16.msra.mxu1 %v3095_v57 }
0x1399   : > { %2990 = vmatprep.subr.bf16.mxu1 %v3212_v8 }
0x139c   : > { %2991 = vmatpush3.bf16.msra.mxu1 %v3096_v58 }
0x139d   : > { %2992 = vmatprep.subr.bf16.mxu1 %v3212_v8 }
0x13a0   : > { %2993 = vmatpush3.bf16.msra.mxu1 %v3097_v59 }
0x13a1   : > { %2994 = vmatprep.subr.bf16.mxu1 %v3212_v8 }
0x13a4   : > { %2995 = vmatpush3.bf16.msra.mxu1 %v3098_v60 }
0x13a5   : > { %2996 = vmatprep.subr.bf16.mxu1 %v3212_v8 }
0x13a8   : > { %2997 = vmatpush3.bf16.msra.mxu1 %v3099_v61 }
0x145e   : > { %v2239_v32 = vpop.f32.mrb[44].mxu1 }
0x145f   : > { %v2240_v33 = vadd.f32 %v2695_v31, %v2239_v32  ;;  %v2972_v34 = vpop.f32.mrb[45].mxu1  ;;  %v3101_v31 = vld [vmem:[%s3809_s14 + $0x8] sm:$0xff]  }
0x1460   : > { %v2242_v35 = vpop.f32.mrb[46].mxu1 }
0x1461   : > { %v3671_v36 = vadd.f32 %v2240_v33, %v3553_v14  ;;  %v2973_v0 = vpop.f32.mrb[47].mxu1  ;;  %v3091_v14 = vld [vmem:[%s3803_s8 + $0x18] sm:$0xff]  }
0x1462   : > { %2977 = vmatpush3.bf16.msra.mxu0 %v3091_v14 }
0x1463   : > { %v2250_v37 = vsel %vm500_vm0, %v3671_v36, 0.0  ;;  %3002 = vmatprep.subr.bf16.mxu0 %v3212_v8 }
0x1464   : > { %2251 = vadd.xlane.f32.xlu0 %v2250_v37 }
0x14f1   : > { %v2252_v38 = vpop.xlane.xlu0 %2251 }
0x14f2   : > { %v2253_v40 = vmul.f32 0.03125, %v2252_v38 }
0x14f4   : > { %v2254_v41 = vsub.f32 %v3671_v36, %v2253_v40 }
0x14f6   : > { %v2255_v42 = vmul.f32 %v2254_v41, %v2254_v41 }
0x14f8   : > { %v2256_v43 = vsel %vm500_vm0, %v2255_v42, 0.0 }
0x14f9   : > { %2257 = vadd.xlane.f32.xlu1 %v2256_v43 }
0x1586   : > { %v2258_v46 = vpop.xlane.xlu1 %2257 }
0x1587   : > { %v2259_v47 = vmul.f32 0.03125, %v2258_v46 }
0x1589   : > { %v2260_v23 = vadd.f32 1e-05, %v2259_v47 }
0x158b   : > { %3142 = vrsqrt.f32 %v2260_v23 }
0x1595   : > { %v3143_v48 = vpop.eup %3142 }
0x1596   : > { %v2262_v50 = vmul.f32 %v3143_v48, %v2254_v41 }
0x1598   : > { %v2269_v52 = vmul.f32 %v2701_v49, %v2262_v50 }
0x159a   : > { %v2276_v53 = vadd.f32 %v2702_v51, %v2269_v52 }
0x159c   : > { %v2277_v54 = vpack.c.bf16 %v2276_v53, %v2276_v53 }
0x159e   : > { %2979 = vmatmul.mubr.msk.bf16.vlgmr.msra.gmra.mrb[40].mxu0 %vm500_vm0, %v2277_v54 }
0x159f   : > { %3006 = vmatprep.mubr.msk.bf16.mxu0 %vm3213_vm1, %v3212_v8  ;;  %3003 = vmatpush3.bf16.msra.mxu0 %v3100_v30 }
0x15a0   : > { %3004 = vmatprep.subr.bf16.mxu0 %v3212_v8  ;;  %v2739_v8 = vld [vmem:[%s3808_s13] ss:$0 sm:$0xff] }
0x15a3   : > { %3005 = vmatpush3.bf16.msra.mxu0 %v3101_v31 }
0x1671   : > { %v2340_v63 = vpop.f32.mrb[40].mxu0 }
0x1672   : > { %v2341_v39 = vadd.f32 %v2708_v62, %v2340_v63  ;;  %v2980_v1 = vpop.f32.mrb[41].mxu0 }
0x1673   : > { %v2343_v2 = vpop.f32.mrb[42].mxu0 }
0x1674   : > { %v2347_v3 = vmul.f32 0.044715, %v2341_v39  ;;  %v2981_v4 = vpop.f32.mrb[43].mxu0  ;;  %v2346_v11 = vmul.f32 0.5, %v2341_v39 }
0x1676   : > { %v2348_v5 = vmul.f32 %v2347_v3, %v2341_v39 }
0x1678   : > { %v2349_v6 = vmul.f32 %v2348_v5, %v2341_v39 }
0x167a   : > { %v2350_v7 = vadd.f32 %v2349_v6, %v2341_v39 }
0x167c   : > { %v2351_v9 = vmul.f32 0.7978845, %v2350_v7 }
0x167e   : > { %3144 = vtanh.f32 %v2351_v9 }
0x1688   : > { %v3145_v10 = vpop.eup %3144 }
0x1689   : > { %v2353_v12 = vadd.f32 1.0, %v3145_v10 }
0x168b   : > { %v2354_v13 = vmul.f32 %v2353_v12, %v2346_v11 }
0x168d   : > { %v2355_v15 = vpack.c.bf16 %v2354_v13, %v2354_v13 }
0x168f   : > { %2999 = vmatmul.mubr.bf16.vlgmr.msra.gmra.mrb[48].mxu1 %v2355_v15 }
0x1762   : > { %v2463_v17 = vpop.f32.mrb[48].mxu1 }
0x1763   : > { %v2464_v18 = vadd.f32 %v2729_v16, %v2463_v17  ;;  %v3000_v19 = vpop.f32.mrb[49].mxu1 }
0x1764   : > { %v2466_v20 = vpop.f32.mrb[50].mxu1 }
0x1765   : > { %v3001_v21 = vpop.f32.mrb[51].mxu1  ;;  %v2469_v22 = vadd.f32 %v2464_v18, %v3671_v36  ;;  %v2738_v36 = vld [vmem:[%s3807_s12] ss:$0 sm:$0xff] }
0x1767   : > { %v2472_v24 = vsel %vm500_vm0, %v2469_v22, 0.0 }
0x1768   : > { %2473 = vadd.xlane.f32.xlu0 %v2472_v24 }
0x17f5   : > { %v2474_v25 = vpop.xlane.xlu0 %2473 }
0x17f6   : > { %v2475_v26 = vmul.f32 0.03125, %v2474_v25 }
0x17f8   : > { %v2476_v27 = vsub.f32 %v2469_v22, %v2475_v26 }
0x17fa   : > { %v2477_v28 = vmul.f32 %v2476_v27, %v2476_v27 }
0x17fc   : > { %v2478_v29 = vsel %vm500_vm0, %v2477_v28, 0.0 }
0x17fd   : > { %2479 = vadd.xlane.f32.xlu0 %v2478_v29 }
0x188a   : > { %v2480_v32 = vpop.xlane.xlu0 %2479 }
0x188b   : > { %v2481_v33 = vmul.f32 0.03125, %v2480_v32 }
0x188d   : > { %v2482_v34 = vadd.f32 1e-05, %v2481_v33 }
0x188f   : > { %3146 = vrsqrt.f32 %v2482_v34 }
0x1899   : > { %v3147_v35 = vpop.eup %3146 }
0x189a   : > { %v2484_v0 = vmul.f32 %v3147_v35, %v2476_v27 }
0x189c   : > { %v2491_v37 = vmul.f32 %v2738_v36, %v2484_v0 }
0x189e   : > { %v2498_v38 = vadd.f32 %v2739_v8, %v2491_v37 }
0x18a0   : > { %v2499_v40 = vpack.c.bf16 %v2498_v38, %v2498_v38 }
0x18a2   : > { %3007 = vmatmul.mubr.msk.bf16.vlgmr.msra.gmra.mrb[44].mxu0 %vm500_vm0, %v2499_v40 }
0x1975   : > { %v2553_v41 = vpop.f32.mrb[44].mxu0 }
0x1976   : > { %2559 = vst [vmem:[%s485_s23] sm:$0xff] %v2553_v41  ;;  %v3008_v42 = vpop.f32.mrb[45].mxu0 }
0x1977   : > { %v2556_v43 = vpop.f32.mrb[46].mxu0 }
0x1978   : > { %3161 = shalt.err (!%p3158_p3)
}
0x1979   : > { %s3162_s1 = scalar_lea.hbm %s3755_s17, 128  ;;  %s3166_s27 = scalar_lea.hbm %s3810_s15, 256 }
0x197a   : > { %p3163_p4 = scmp.ne.s32.totalorder %s3755_s17, %s3162_s1  ;;  %p3167_p9 = scmp.lt.u32.totalorder %s3755_s17, %s3810_s15 }
0x197b   : > { %p3168_p10 = scmp.lt.u32.totalorder %s3166_s27, %s3162_s1  ;;  %p3170_p12 = scmp.lt.u32.totalorder %s3162_s1, %s3755_s17 }
0x197c   : > { %p3164_p7 = pnand %p3163_p4, %p3347_p5 }
0x197d   : > { %p3169_p11 = por %p3168_p10, %p3167_p9 }
0x197e   : > { %p3165_p8 = pneg %p3164_p7 }
0x197f   : > { %p3171_p13 = por %p3170_p12, %p3169_p11 }
0x1981   : > { %p3172_p0 = pnand %p3171_p13, %p3165_p8 }
0x1983   : > { %3175 = shalt.err (!%p3172_p0)
}
0x1984   : > { %3010 = dma.vmem_to_hbm [thread:$0]  (%p3347_p5), %s3750_s0, 128, %s3755_s17, %s2561_s26   ;;  %v3009_v44 = vpop.f32.mrb[47].mxu0 }
0x1985 PF: > { %p3016_p1 = scmp.ge.s32.totalorder %s3210_s21, 2  ;;  %s2586_s2 = sand.u32 1, %s3198_s18  }
0x1986   : > { %s2587_s3 = scalar_lea.sflag [#allocation4], %s2586_s2 }
0x1987   : > { %p3013_p2 = pnand %p3016_p1, %p3351_p6 }
0x1989   : > { %3193 = dma.done.wait (!%p3013_p2), %s2587_s3, 128  }
0x198a   : > { %3195 = vsyncadd (!%p3013_p2), %s2587_s3, 4294967168  ;;  %s3850_s16 = sld [smem:[#allocation6_spill]]  ;;  %p25_p3 = scmp.ge.s32.totalorder %s3334_s24, 4  }
0x198b   : > { %s3851_s18 = smov %s3202_s19  ;;  %s3852_s19 = smov %s3206_s20 }
0x198c   : > { %s3854_s21 = smov %s3334_s24  ;;  %27 = sbr.rel (!%p25_p3) target bundleno = 8 (0x8), region = 126 }
0x1990   : > { %s3853_s20 = smov %s3850_s16 }
0x1993   :  { %2592 = vsyncpa [#allocation4], 1 }
0x1994   :  { %2594 = vsyncpa [#allocation4 + $0x1], 1 }

</bundles_post_ra>
